<compile_context>
chip_gen: v6e
topology: v6e:2x2x1
jax: 0.10.0
libtpu: 0.0.40
codegen_flags: <defaults>
</compile_context>

<pallas_src>
import jax
import jax.numpy as jnp
from jax.experimental import pallas as pl
from jax.experimental.pallas import tpu as pltpu

N_FEATURES = 10
H1 = 128
H2 = 64
OUT = 1


def mlp_kernel(x_ref, w1_ref, b1_ref, w2_ref, b2_ref, w3_ref, b3_ref, o_ref):
    # x_ref: (N_FEATURES, tb) with the batch on the lane axis.
    xT = x_ref[...]
    # (H1, N_FEATURES) @ (N_FEATURES, tb) -> (H1, tb)
    h1 = jnp.dot(w1_ref[...], xT, preferred_element_type=jnp.float32)
    h1 = jnp.maximum(h1 + b1_ref[...], 0.0)
    # (H2, H1) @ (H1, tb) -> (H2, tb)
    h2 = jnp.dot(w2_ref[...], h1, preferred_element_type=jnp.float32)
    h2 = jnp.maximum(h2 + b2_ref[...], 0.0)
    # (1, H2) @ (H2, tb) -> (1, tb)  -- lane-dense output row
    y = jnp.dot(w3_ref[...], h2, preferred_element_type=jnp.float32)
    o_ref[...] = (y + b3_ref[0, 0]).astype(o_ref.dtype)


def mlp_forward(x, params, *, tb=1024):
    """x: (B, N_FEATURES) float32 -> (B, 1) float32."""
    w1, b1, w2, b2, w3, b3 = params
    B = x.shape[0]

    # Pad the batch to a multiple of the (large) batch tile.
    B_pad = ((B + tb - 1) // tb) * tb
    if B_pad != B:
        x = jnp.pad(x, ((0, B_pad - B), (0, 0)))

    # Put the batch on the lane axis.
    xT = x.T  # (N_FEATURES, B_pad)

    grid = (B_pad // tb,)

    out = pl.pallas_call(
        mlp_kernel,
        out_shape=jax.ShapeDtypeStruct((1, B_pad), jnp.float32),
        grid=grid,
        in_specs=[
            # Batch-tiled input, batch on lanes.
            pl.BlockSpec((N_FEATURES, tb), lambda i: (0, i)),
            # Weights/biases: whole array, constant index map -> fetched once,
            # VMEM-resident across all grid steps.
            pl.BlockSpec((H1, N_FEATURES), lambda i: (0, 0)),
            pl.BlockSpec((H1, 1), lambda i: (0, 0)),
            pl.BlockSpec((H2, H1), lambda i: (0, 0)),
            pl.BlockSpec((H2, 1), lambda i: (0, 0)),
            pl.BlockSpec((OUT, H2), lambda i: (0, 0)),
            # Scalar output bias lives in SMEM.
            pl.BlockSpec(memory_space=pltpu.MemorySpace.SMEM),
        ],
        out_specs=pl.BlockSpec((1, tb), lambda i: (0, i)),
        compiler_params=pltpu.CompilerParams(
            dimension_semantics=("parallel",),
        ),
    )(xT, w1, b1, w2, b2, w3, b3)

    # Back to PyTorch convention: (B, 1), dropping the batch padding.
    return out[0, :B, None]


def init_params(key):
    """PyTorch-style Linear init; weights stored [out, in], biases as columns."""
    ks = jax.random.split(key, 6)

    def u(k, shape, fan_in):
        bound = 1.0 / (fan_in ** 0.5)
        return jax.random.uniform(k, shape, jnp.float32, -bound, bound)

    w1 = u(ks[0], (H1, N_FEATURES), N_FEATURES)
    b1 = u(ks[1], (H1, 1), N_FEATURES)
    w2 = u(ks[2], (H2, H1), H1)
    b2 = u(ks[3], (H2, 1), H1)
    w3 = u(ks[4], (OUT, H2), H2)
    b3 = u(ks[5], (1, 1), H2)
    return (w1, b1, w2, b2, w3, b3)


def mlp_ref(x, params):
    w1, b1, w2, b2, w3, b3 = params
    h1 = jnp.maximum(x @ w1.T + b1[:, 0], 0.0)
    h2 = jnp.maximum(h1 @ w2.T + b2[:, 0], 0.0)
    return h2 @ w3.T + b3[:, 0]


if __name__ == "__main__":
    key = jax.random.PRNGKey(0)
    k_param, k_x = jax.random.split(key)

    params = init_params(k_param)
    batch = 200  # small, non-multiple-of-128 batch: exercises the padding path
    x = jax.random.normal(k_x, (batch, N_FEATURES), jnp.float32)

    ref = mlp_ref(x, params)

    # Default (large) tile: single grid step for this small batch.
    out = jax.block_until_ready(mlp_forward(x, params))
    assert out.shape == (batch, OUT)
    assert jnp.allclose(out, ref, atol=1e-4, rtol=1e-4), "mismatch vs JAX reference"

    # Smaller tile: multiple grid steps (exercises batch tiling + padding slice).
    out2 = jax.block_until_ready(mlp_forward(x, params, tb=128))
    assert out2.shape == (batch, OUT)
    assert jnp.allclose(out2, ref, atol=1e-4, rtol=1e-4), "mismatch vs JAX reference (tb=128)"

    print("KERNEL_OK")
</pallas_src>

<mosaic_0001>
module attributes {stable_mosaic.version = 11 : i64} {
  func.func @mlp_kernel(%arg0: i32, %arg1: memref<10x1024xf32, #tpu.memory_space<vmem>>, %arg2: memref<128x10xf32, #tpu.memory_space<vmem>>, %arg3: memref<128x1xf32, #tpu.memory_space<vmem>>, %arg4: memref<64x128xf32, #tpu.memory_space<vmem>>, %arg5: memref<64x1xf32, #tpu.memory_space<vmem>>, %arg6: memref<1x64xf32, #tpu.memory_space<vmem>>, %arg7: memref<1x1xf32, #tpu.memory_space<smem>>, %arg8: memref<1x1024xf32, #tpu.memory_space<vmem>>) attributes {dimension_semantics = [#tpu.dimension_semantics<parallel>], iteration_bounds = array<i64: 1>, scalar_prefetch = 0 : i64, scratch_operands = 0 : i64, tpu.core_type = #tpu.core_type<tc>, window_params = [{transform_indices = @transform_0, window_bounds = array<i64: 10, 1024>}, {pipeline_mode = #tpu.pipeline_mode<synchronous>, transform_indices = @transform_1, window_bounds = array<i64: 128, 10>}, {pipeline_mode = #tpu.pipeline_mode<synchronous>, transform_indices = @transform_2, window_bounds = array<i64: 128, 1>}, {pipeline_mode = #tpu.pipeline_mode<synchronous>, transform_indices = @transform_3, window_bounds = array<i64: 64, 128>}, {pipeline_mode = #tpu.pipeline_mode<synchronous>, transform_indices = @transform_4, window_bounds = array<i64: 64, 1>}, {pipeline_mode = #tpu.pipeline_mode<synchronous>, transform_indices = @transform_5, window_bounds = array<i64: 1, 64>}, {transform_indices = @transform_6, window_bounds = array<i64: 1, 1>}, {transform_indices = @transform_7, window_bounds = array<i64: 1, 1024>}]} {
    %c0 = arith.constant 0 : index
    %c0_0 = arith.constant 0 : index
    %0 = vector.load %arg1[%c0, %c0_0] : memref<10x1024xf32, #tpu.memory_space<vmem>>, vector<10x1024xf32>
    %c0_1 = arith.constant 0 : index
    %c0_2 = arith.constant 0 : index
    %1 = vector.load %arg2[%c0_1, %c0_2] : memref<128x10xf32, #tpu.memory_space<vmem>>, vector<128x10xf32>
    %cst = arith.constant dense<0.000000e+00> : vector<128x1024xf32>
    %2 = tpu.matmul %1, %0, %cst {dimension_numbers = #tpu.dot_dimension_numbers<[1], [0], [0], [1], [0, 0, 1, 1], [], []>} : vector<128x10xf32>, vector<10x1024xf32>, vector<128x1024xf32> -> vector<128x1024xf32>
    %c0_3 = arith.constant 0 : index
    %c0_4 = arith.constant 0 : index
    %3 = vector.load %arg3[%c0_3, %c0_4] : memref<128x1xf32, #tpu.memory_space<vmem>>, vector<128x1xf32>
    %4 = vector.broadcast %3 : vector<128x1xf32> to vector<128x1024xf32>
    %5 = arith.addf %2, %4 : vector<128x1024xf32>
    %cst_5 = arith.constant 0.000000e+00 : f32
    %6 = vector.broadcast %cst_5 : f32 to vector<128x1024xf32>
    %7 = arith.maximumf %5, %6 : vector<128x1024xf32>
    %c0_6 = arith.constant 0 : index
    %c0_7 = arith.constant 0 : index
    %8 = vector.load %arg4[%c0_6, %c0_7] : memref<64x128xf32, #tpu.memory_space<vmem>>, vector<64x128xf32>
    %cst_8 = arith.constant dense<0.000000e+00> : vector<64x1024xf32>
    %9 = tpu.matmul %8, %7, %cst_8 {dimension_numbers = #tpu.dot_dimension_numbers<[1], [0], [0], [1], [0, 0, 1, 1], [], []>} : vector<64x128xf32>, vector<128x1024xf32>, vector<64x1024xf32> -> vector<64x1024xf32>
    %c0_9 = arith.constant 0 : index
    %c0_10 = arith.constant 0 : index
    %10 = vector.load %arg5[%c0_9, %c0_10] : memref<64x1xf32, #tpu.memory_space<vmem>>, vector<64x1xf32>
    %11 = vector.broadcast %10 : vector<64x1xf32> to vector<64x1024xf32>
    %12 = arith.addf %9, %11 : vector<64x1024xf32>
    %cst_11 = arith.constant 0.000000e+00 : f32
    %13 = vector.broadcast %cst_11 : f32 to vector<64x1024xf32>
    %14 = arith.maximumf %12, %13 : vector<64x1024xf32>
    %c0_12 = arith.constant 0 : index
    %c0_13 = arith.constant 0 : index
    %15 = vector.load %arg6[%c0_12, %c0_13] : memref<1x64xf32, #tpu.memory_space<vmem>>, vector<1x64xf32>
    %cst_14 = arith.constant dense<0.000000e+00> : vector<1x1024xf32>
    %16 = tpu.matmul %15, %14, %cst_14 {dimension_numbers = #tpu.dot_dimension_numbers<[1], [0], [0], [1], [0, 0, 1, 1], [], []>} : vector<1x64xf32>, vector<64x1024xf32>, vector<1x1024xf32> -> vector<1x1024xf32>
    %c0_15 = arith.constant 0 : index
    %c0_16 = arith.constant 0 : index
    %17 = memref.load %arg7[%c0_15, %c0_16] : memref<1x1xf32, #tpu.memory_space<smem>>
    %18 = vector.broadcast %17 : f32 to vector<1x1024xf32>
    %19 = arith.addf %16, %18 : vector<1x1024xf32>
    %c0_17 = arith.constant 0 : index
    %c0_18 = arith.constant 0 : index
    %20 = vector.load %arg8[%c0_17, %c0_18] : memref<1x1024xf32, #tpu.memory_space<vmem>>, vector<1x1024xf32>
    tpu.vector_store %arg8[%c0_17, %c0_18], %19 {strides = array<i32>} : memref<1x1024xf32, #tpu.memory_space<vmem>>, vector<1x1024xf32>,
    return
  }
  func.func @transform_0(%arg0: i32) -> (i32, i32) {
    %c0_i32 = arith.constant 0 : i32
    %c0_i32_0 = arith.constant 0 : i32
    return %c0_i32, %arg0 : i32, i32
  }
  func.func @transform_1(%arg0: i32) -> (i32, i32) {
    %c0_i32 = arith.constant 0 : i32
    %c0_i32_0 = arith.constant 0 : i32
    %c0_i32_1 = arith.constant 0 : i32
    return %c0_i32, %c0_i32_0 : i32, i32
  }
  func.func @transform_2(%arg0: i32) -> (i32, i32) {
    %c0_i32 = arith.constant 0 : i32
    %c0_i32_0 = arith.constant 0 : i32
    %c0_i32_1 = arith.constant 0 : i32
    return %c0_i32, %c0_i32_0 : i32, i32
  }
  func.func @transform_3(%arg0: i32) -> (i32, i32) {
    %c0_i32 = arith.constant 0 : i32
    %c0_i32_0 = arith.constant 0 : i32
    %c0_i32_1 = arith.constant 0 : i32
    return %c0_i32, %c0_i32_0 : i32, i32
  }
  func.func @transform_4(%arg0: i32) -> (i32, i32) {
    %c0_i32 = arith.constant 0 : i32
    %c0_i32_0 = arith.constant 0 : i32
    %c0_i32_1 = arith.constant 0 : i32
    return %c0_i32, %c0_i32_0 : i32, i32
  }
  func.func @transform_5(%arg0: i32) -> (i32, i32) {
    %c0_i32 = arith.constant 0 : i32
    %c0_i32_0 = arith.constant 0 : i32
    %c0_i32_1 = arith.constant 0 : i32
    return %c0_i32, %c0_i32_0 : i32, i32
  }
  func.func @transform_6(%arg0: i32) -> (i32, i32) {
    %c0_i32 = arith.constant 0 : i32
    %c0_i32_0 = arith.constant 0 : i32
    %c0_i32_1 = arith.constant 0 : i32
    return %c0_i32, %c0_i32_0 : i32, i32
  }
  func.func @transform_7(%arg0: i32) -> (i32, i32) {
    %c0_i32 = arith.constant 0 : i32
    %c0_i32_0 = arith.constant 0 : i32
    return %c0_i32, %arg0 : i32, i32
  }
}

</mosaic_0001>

<bundles_post_ra>
// kernel: tpu_custom_call.1
= control target key start
LH: loop header
LB: loop body
LE: loop exit
PB: predicated region body
PF: predicated region fallthrough
CT: control target
= control target key end

     0   :  { %vm205_vm0 = vcmask 1041408   ;;  %vm156_vm1 = vcmask 80896   ;;  %v3209_v9 = vmov 0.0   ;;  %v2043_v23 = vmov 0   ;;  %s3201_s0 = inlined_call_operand.vmem [shape: f32[10,1024], index: 0, kind: input, shape index: {}]   ;;  %s3202_s1 = inlined_call_operand.vmem [shape: f32[128,10], index: 1, kind: input, shape index: {}]   ;;  %s3203_s2 = inlined_call_operand.vmem [shape: f32[128,1], index: 2, kind: input, shape index: {}]   ;;  %s3204_s3 = inlined_call_operand.vmem [shape: f32[64,128], index: 3, kind: input, shape index: {}]   ;;  %s3205_s4 = inlined_call_operand.vmem [shape: f32[64,1], index: 4, kind: input, shape index: {}]   ;;  %s3206_s5 = inlined_call_operand.vmem [shape: f32[1,64], index: 5, kind: input, shape index: {}]   ;;  %s3207_s6 = inlined_call_operand.<no memory space> [shape: f32[1,1], index: 6, kind: input, shape index: {}]   ;;  %s3208_s7 = inlined_call_operand.hbm [shape: f32[1,1024], index: 7, kind: output, shape index: {}]  }
   0x1   :  { %v37_v0 = vld [vmem:[%s3201_s0 + $0x48] sm:$0x3]  ;;  %v39_v1 = vld [vmem:[%s3201_s0 + $0x58] sm:$0x3]  ;;  %v36_v3 = vld [vmem:[%s3201_s0 + $0x40] sm:$0x3]  ;;  %294 = vmatprep.mubr.f32.mxu0 %v3209_v9  ;;  %455 = vmatprep.mubr.f32.mxu1 %v3209_v9 }
   0x2   :  { %v29_v2 = vld [vmem:[%s3201_s0 + $0x8] sm:$0xff]  ;;  %1938 = vmatprep.subr.msk.mxu0 %vm205_vm0, %v37_v0  ;;  %1956 = vmatprep.subr.msk.mxu1 %vm205_vm0, %v39_v1  ;;  %v38_v4 = vld [vmem:[%s3201_s0 + $0x50] sm:$0x3]  ;;  %v31_v5 = vld [vmem:[%s3201_s0 + $0x18] sm:$0xff] }
   0x3   :  { %1939 = vmatpush1.msk.msra.mxu0 %vm205_vm0, %v36_v3  ;;  %1957 = vmatpush1.msk.msra.mxu1 %vm205_vm0, %v38_v4  ;;  %v28_v6 = vld [vmem:[%s3201_s0] sm:$0xff]  ;;  %v30_v7 = vld [vmem:[%s3201_s0 + $0x10] sm:$0xff]  ;;  %v41_v10 = vld [vmem:[%s3201_s0 + $0x68] sm:$0x3] }
   0x4   :  { %260 = vmatprep.subr.mxu0 %v29_v2  ;;  %421 = vmatprep.subr.mxu1 %v31_v5  ;;  %v2117_v8 = vld [vmem:[%s3202_s1] sm:$0xff]  ;;  %v43_v11 = vld [vmem:[%s3201_s0 + $0x78] sm:$0x3]  ;;  %v42_v13 = vld [vmem:[%s3201_s0 + $0x70] sm:$0x3] }
   0x5   :  { %261 = vmatpush1.msra.mxu0 %v28_v6  ;;  %422 = vmatpush1.msra.mxu1 %v30_v7  ;;  %v40_v12 = vld [vmem:[%s3201_s0 + $0x60] sm:$0x3]  ;;  %v2142_v14 = vld [vmem:[%s3202_s1 + $0x8] sm:$0xff]  ;;  %v35_v16 = vld [vmem:[%s3201_s0 + $0x38] sm:$0xff] }
   0x6   :  { %1940 = vmatmul.mubr.msk.f32.vlgmr.msra.gmra.mxu0 %vm156_vm1, %v2117_v8  ;;  %1958 = vmatmul.mubr.msk.f32.vlgmr.msra.gmra.mxu1 %vm156_vm1, %v2117_v8  ;;  %v33_v15 = vld [vmem:[%s3201_s0 + $0x28] sm:$0xff]  ;;  %v32_v17 = vld [vmem:[%s3201_s0 + $0x20] sm:$0xff]  ;;  %v34_v18 = vld [vmem:[%s3201_s0 + $0x30] sm:$0xff] }
   0x7   :  { %1974 = vmatprep.subr.msk.mxu0 %vm205_vm0, %v41_v10  ;;  %1992 = vmatprep.subr.msk.mxu1 %vm205_vm0, %v43_v11  ;;  %v2169_v19 = vld [vmem:[%s3202_s1 + $0x10] sm:$0xff]  ;;  %v73_v20 = vld [vmem:[%s3203_s2 + $0x68] sm:$0xff]  ;;  %v75_v21 = vld [vmem:[%s3203_s2 + $0x78] sm:$0xff] }
   0x8   :  { %1975 = vmatpush1.msk.msra.mxu0 %vm205_vm0, %v40_v12  ;;  %1993 = vmatpush1.msk.msra.mxu1 %vm205_vm0, %v42_v13  ;;  %v2186_v22 = vld [vmem:[%s3202_s1 + $0x18] sm:$0xff]  ;;  %v72_v24 = vld [vmem:[%s3203_s2 + $0x60] sm:$0xff]  ;;  %v74_v25 = vld [vmem:[%s3203_s2 + $0x70] sm:$0xff] }
   0x9   :  { %300 = vmatprep.mubr.f32.mxu0 %v3209_v9  ;;  %461 = vmatprep.mubr.f32.mxu1 %v3209_v9 }
   0xa   :  { %1941 = vmatmul.mubr.msk.f32.gmra.mxu0 %vm156_vm1, %v2142_v14  ;;  %1959 = vmatmul.mubr.msk.f32.gmra.mxu1 %vm156_vm1, %v2142_v14 }
   0xb   :  { %306 = vmatprep.mubr.f32.mxu0 %v3209_v9  ;;  %467 = vmatprep.mubr.f32.mxu1 %v3209_v9 }
   0xc   :  { %582 = vmatprep.subr.mxu0 %v33_v15  ;;  %743 = vmatprep.subr.mxu1 %v35_v16 }
   0xd   :  { %583 = vmatpush1.msra.mxu0 %v32_v17  ;;  %744 = vmatpush1.msra.mxu1 %v34_v18 }
   0xe   :  { %1942 = vmatmul.mubr.msk.f32.gmra.mxu0 %vm156_vm1, %v2169_v19  ;;  %1960 = vmatmul.mubr.msk.f32.gmra.mxu1 %vm156_vm1, %v2169_v19 }
   0xf   :  { %312 = vmatprep.mubr.f32.mxu0 %v3209_v9  ;;  %473 = vmatprep.mubr.f32.mxu1 %v3209_v9 }
  0x10   :  { %2019 = vset.pattern.permute.xlu1 %v2043_v23  ;;  %2018 = vset.pattern.permute.xlu0 %v2043_v23 }
  0x11   :  { %143 = vperm.xlu1 %2019, %v73_v20   ;;  %153 = vperm.xlu0 %2018, %v75_v21  }
  0x12   :  { %1943 = vmatmul.mubr.msk.f32.gmra.mxu0 %vm156_vm1, %v2186_v22  ;;  %1961 = vmatmul.mubr.msk.f32.gmra.mxu1 %vm156_vm1, %v2186_v22 }
  0x13   :  { %13 = vsyncpa [#allocation4], 0  ;;  %318 = vmatprep.mubr.f32.mxu0 %v3209_v9  ;;  %479 = vmatprep.mubr.f32.mxu1 %v3209_v9  ;;  %v2203_v26 = vld [vmem:[%s3202_s1 + $0x20] sm:$0xff]  ;;  %v70_v27 = vld [vmem:[%s3203_s2 + $0x50] sm:$0xff]  ;;  %vm1577_vm2 = vcmask 523264  }
  0x14   :  { %v71_v28 = vld [vmem:[%s3203_s2 + $0x58] sm:$0xff]  ;;  %v2220_v29 = vld [vmem:[%s3202_s1 + $0x28] sm:$0xff]  ;;  %v68_v30 = vld [vmem:[%s3203_s2 + $0x40] sm:$0xff] }
  0x15   :  { %138 = vperm.xlu1 %2019, %v72_v24   ;;  %148 = vperm.xlu0 %2018, %v74_v25   ;;  %v69_v31 = vld [vmem:[%s3203_s2 + $0x48] sm:$0xff]  ;;  %v2237_v32 = vld [vmem:[%s3202_s1 + $0x30] sm:$0xff]  ;;  %v67_v34 = vld [vmem:[%s3203_s2 + $0x38] sm:$0xff] }
  0x16   :  { %1944 = vmatmul.mubr.msk.f32.gmra.mxu0 %vm156_vm1, %v2203_v26  ;;  %1962 = vmatmul.mubr.msk.f32.gmra.mxu1 %vm156_vm1, %v2203_v26  ;;  %v66_v33 = vld [vmem:[%s3203_s2 + $0x30] sm:$0xff]  ;;  %v2254_v35 = vld [vmem:[%s3202_s1 + $0x38] sm:$0xff]  ;;  %v64_v36 = vld [vmem:[%s3203_s2 + $0x20] sm:$0xff] }
  0x17   :  { %324 = vmatprep.mubr.f32.mxu0 %v3209_v9  ;;  %485 = vmatprep.mubr.f32.mxu1 %v3209_v9  ;;  %v65_v37 = vld [vmem:[%s3203_s2 + $0x28] sm:$0xff]  ;;  %v2271_v38 = vld [vmem:[%s3202_s1 + $0x40] sm:$0xff]  ;;  %v62_v39 = vld [vmem:[%s3203_s2 + $0x10] sm:$0xff] }
  0x18   :  { %v63_v40 = vld [vmem:[%s3203_s2 + $0x18] sm:$0xff]  ;;  %v2288_v41 = vld [vmem:[%s3202_s1 + $0x48] sm:$0xff]  ;;  %v60_v42 = vld [vmem:[%s3203_s2] sm:$0xff] }
  0x19   :  { %128 = vperm.xlu1 %2019, %v70_v27   ;;  %133 = vperm.xlu0 %2018, %v71_v28   ;;  %v61_v43 = vld [vmem:[%s3203_s2 + $0x8] sm:$0xff]  ;;  %v2305_v44 = vld [vmem:[%s3202_s1 + $0x50] sm:$0xff]  ;;  %v1017_v45 = vld [vmem:[%s3205_s4 + $0x38] sm:$0xff] }
  0x1a   :  { %1945 = vmatmul.mubr.msk.f32.gmra.mxu0 %vm156_vm1, %v2220_v29  ;;  %1963 = vmatmul.mubr.msk.f32.gmra.mxu1 %vm156_vm1, %v2220_v29  ;;  %v1016_v46 = vld [vmem:[%s3205_s4 + $0x30] sm:$0xff]  ;;  %v2322_v47 = vld [vmem:[%s3202_s1 + $0x58] sm:$0xff]  ;;  %v1015_v48 = vld [vmem:[%s3205_s4 + $0x28] sm:$0xff] }
  0x1b   :  { %330 = vmatprep.mubr.f32.mxu0 %v3209_v9  ;;  %491 = vmatprep.mubr.f32.mxu1 %v3209_v9  ;;  %v1014_v49 = vld [vmem:[%s3205_s4 + $0x20] sm:$0xff]  ;;  %v1013_v51 = vld [vmem:[%s3205_s4 + $0x18] sm:$0xff]  ;;  %v1012_v52 = vld [vmem:[%s3205_s4 + $0x10] sm:$0xff] }
  0x1c   :  { %v2339_v50 = vld [vmem:[%s3202_s1 + $0x60] sm:$0xff]  ;;  %v2356_v53 = vld [vmem:[%s3202_s1 + $0x68] sm:$0xff]  ;;  %v2373_v56 = vld [vmem:[%s3202_s1 + $0x70] sm:$0xff] }
  0x1d   :  { %118 = vperm.xlu1 %2019, %v68_v30   ;;  %123 = vperm.xlu0 %2018, %v69_v31   ;;  %v1011_v54 = vld [vmem:[%s3205_s4 + $0x8] sm:$0xff]  ;;  %v1010_v55 = vld [vmem:[%s3205_s4] sm:$0xff]  ;;  %v2384_v57 = vld [vmem:[%s3202_s1 + $0x78] sm:$0xff] }
  0x1e   :  { %1946 = vmatmul.mubr.msk.f32.gmra.mxu0 %vm156_vm1, %v2237_v32  ;;  %1964 = vmatmul.mubr.msk.f32.gmra.mxu1 %vm156_vm1, %v2237_v32 }
  0x1f   :  { %336 = vmatprep.mubr.f32.mxu0 %v3209_v9  ;;  %497 = vmatprep.mubr.f32.mxu1 %v3209_v9 }
  0x21   :  { %108 = vperm.xlu1 %2019, %v66_v33   ;;  %113 = vperm.xlu0 %2018, %v67_v34  }
  0x22   :  { %1947 = vmatmul.mubr.msk.f32.gmra.mxu0 %vm156_vm1, %v2254_v35  ;;  %1965 = vmatmul.mubr.msk.f32.gmra.mxu1 %vm156_vm1, %v2254_v35 }
  0x23   :  { %342 = vmatprep.mubr.f32.mxu0 %v3209_v9  ;;  %503 = vmatprep.mubr.f32.mxu1 %v3209_v9 }
  0x25   :  { %98 = vperm.xlu1 %2019, %v64_v36   ;;  %103 = vperm.xlu0 %2018, %v65_v37  }
  0x26   :  { %1948 = vmatmul.mubr.msk.f32.gmra.mxu0 %vm156_vm1, %v2271_v38  ;;  %1966 = vmatmul.mubr.msk.f32.gmra.mxu1 %vm156_vm1, %v2271_v38 }
  0x27   :  { %348 = vmatprep.mubr.f32.mxu0 %v3209_v9  ;;  %509 = vmatprep.mubr.f32.mxu1 %v3209_v9 }
  0x29   :  { %88 = vperm.xlu1 %2019, %v62_v39   ;;  %93 = vperm.xlu0 %2018, %v63_v40  }
  0x2a   :  { %1949 = vmatmul.mubr.msk.f32.gmra.mxu0 %vm156_vm1, %v2288_v41  ;;  %1967 = vmatmul.mubr.msk.f32.gmra.mxu1 %vm156_vm1, %v2288_v41 }
  0x2b   :  { %354 = vmatprep.mubr.f32.mxu0 %v3209_v9  ;;  %515 = vmatprep.mubr.f32.mxu1 %v3209_v9 }
  0x2d   :  { %78 = vperm.xlu1 %2019, %v60_v42   ;;  %83 = vperm.xlu0 %2018, %v61_v43  }
  0x2e   :  { %1950 = vmatmul.mubr.msk.f32.gmra.mxu0 %vm156_vm1, %v2305_v44  ;;  %1968 = vmatmul.mubr.msk.f32.gmra.mxu1 %vm156_vm1, %v2305_v44 }
  0x2f   :  { %360 = vmatprep.mubr.f32.mxu0 %v3209_v9  ;;  %521 = vmatprep.mubr.f32.mxu1 %v3209_v9 }
  0x31   :  { %1055 = vperm.xlu0 %2018, %v1017_v45   ;;  %1050 = vperm.xlu1 %2019, %v1016_v46  }
  0x32   :  { %1951 = vmatmul.mubr.msk.f32.gmra.mxu0 %vm156_vm1, %v2322_v47  ;;  %1969 = vmatmul.mubr.msk.f32.gmra.mxu1 %vm156_vm1, %v2322_v47 }
  0x33   :  { %366 = vmatprep.mubr.f32.mxu0 %v3209_v9  ;;  %527 = vmatprep.mubr.f32.mxu1 %v3209_v9 }
  0x35   :  { %1045 = vperm.xlu0 %2018, %v1015_v48   ;;  %1040 = vperm.xlu1 %2019, %v1014_v49  }
  0x36   :  { %1952 = vmatmul.mubr.msk.f32.gmra.mxu0 %vm156_vm1, %v2339_v50  ;;  %1970 = vmatmul.mubr.msk.f32.gmra.mxu1 %vm156_vm1, %v2339_v50 }
  0x37   :  { %372 = vmatprep.mubr.f32.mxu0 %v3209_v9  ;;  %533 = vmatprep.mubr.f32.mxu1 %v3209_v9 }
  0x39   :  { %1035 = vperm.xlu0 %2018, %v1013_v51   ;;  %1030 = vperm.xlu1 %2019, %v1012_v52  }
  0x3a   :  { %1953 = vmatmul.mubr.msk.f32.gmra.mxu0 %vm156_vm1, %v2356_v53  ;;  %1971 = vmatmul.mubr.msk.f32.gmra.mxu1 %vm156_vm1, %v2356_v53 }
  0x3b   :  { %378 = vmatprep.mubr.f32.mxu0 %v3209_v9  ;;  %539 = vmatprep.mubr.f32.mxu1 %v3209_v9 }
  0x3d   :  { %1025 = vperm.xlu0 %2018, %v1011_v54   ;;  %1020 = vperm.xlu1 %2019, %v1010_v55  }
  0x3e   :  { %1954 = vmatmul.mubr.msk.f32.gmra.mxu0 %vm156_vm1, %v2373_v56  ;;  %1972 = vmatmul.mubr.msk.f32.gmra.mxu1 %vm156_vm1, %v2373_v56 }
  0x3f   :  { %384 = vmatprep.mubr.f32.mxu0 %v3209_v9  ;;  %545 = vmatprep.mubr.f32.mxu1 %v3209_v9 }
  0x42   :  { %1955 = vmatmul.mubr.msk.f32.gmra.mxu0 %vm156_vm1, %v2384_v57  ;;  %1973 = vmatmul.mubr.msk.f32.gmra.mxu1 %vm156_vm1, %v2384_v57 }
  0x43   :  { %616 = vmatprep.mubr.f32.mxu0 %v3209_v9  ;;  %777 = vmatprep.mubr.f32.mxu1 %v3209_v9 }
  0x46   :  { %1976 = vmatmul.mubr.msk.f32.vlgmr.msra.gmra.mxu0 %vm156_vm1, %v2117_v8  ;;  %1994 = vmatmul.mubr.msk.f32.vlgmr.msra.gmra.mxu1 %vm156_vm1, %v2117_v8 }
  0x47   :  { %622 = vmatprep.mubr.f32.mxu0 %v3209_v9  ;;  %783 = vmatprep.mubr.f32.mxu1 %v3209_v9 }
  0x4a   :  { %1977 = vmatmul.mubr.msk.f32.gmra.mxu0 %vm156_vm1, %v2142_v14  ;;  %1995 = vmatmul.mubr.msk.f32.gmra.mxu1 %vm156_vm1, %v2142_v14 }
  0x4b   :  { %628 = vmatprep.mubr.f32.mxu0 %v3209_v9  ;;  %789 = vmatprep.mubr.f32.mxu1 %v3209_v9 }
  0x4e   :  { %1978 = vmatmul.mubr.msk.f32.gmra.mxu0 %vm156_vm1, %v2169_v19  ;;  %1996 = vmatmul.mubr.msk.f32.gmra.mxu1 %vm156_vm1, %v2169_v19 }
  0x4f   :  { %634 = vmatprep.mubr.f32.mxu0 %v3209_v9  ;;  %795 = vmatprep.mubr.f32.mxu1 %v3209_v9 }
  0x52   :  { %1979 = vmatmul.mubr.msk.f32.gmra.mxu0 %vm156_vm1, %v2186_v22  ;;  %1997 = vmatmul.mubr.msk.f32.gmra.mxu1 %vm156_vm1, %v2186_v22 }
  0x53   :  { %640 = vmatprep.mubr.f32.mxu0 %v3209_v9  ;;  %801 = vmatprep.mubr.f32.mxu1 %v3209_v9 }
  0x56   :  { %1980 = vmatmul.mubr.msk.f32.gmra.mxu0 %vm156_vm1, %v2203_v26  ;;  %1998 = vmatmul.mubr.msk.f32.gmra.mxu1 %vm156_vm1, %v2203_v26 }
  0x57   :  { %646 = vmatprep.mubr.f32.mxu0 %v3209_v9  ;;  %807 = vmatprep.mubr.f32.mxu1 %v3209_v9 }
  0x5a   :  { %1981 = vmatmul.mubr.msk.f32.gmra.mxu0 %vm156_vm1, %v2220_v29  ;;  %1999 = vmatmul.mubr.msk.f32.gmra.mxu1 %vm156_vm1, %v2220_v29 }
  0x5b   :  { %652 = vmatprep.mubr.f32.mxu0 %v3209_v9  ;;  %813 = vmatprep.mubr.f32.mxu1 %v3209_v9 }
  0x5e   :  { %1982 = vmatmul.mubr.msk.f32.gmra.mxu0 %vm156_vm1, %v2237_v32  ;;  %2000 = vmatmul.mubr.msk.f32.gmra.mxu1 %vm156_vm1, %v2237_v32 }
  0x5f   :  { %658 = vmatprep.mubr.f32.mxu0 %v3209_v9  ;;  %819 = vmatprep.mubr.f32.mxu1 %v3209_v9 }
  0x62   :  { %1983 = vmatmul.mubr.msk.f32.gmra.mxu0 %vm156_vm1, %v2254_v35  ;;  %2001 = vmatmul.mubr.msk.f32.gmra.mxu1 %vm156_vm1, %v2254_v35 }
  0x63   :  { %664 = vmatprep.mubr.f32.mxu0 %v3209_v9  ;;  %825 = vmatprep.mubr.f32.mxu1 %v3209_v9 }
  0x66   :  { %1984 = vmatmul.mubr.msk.f32.gmra.mxu0 %vm156_vm1, %v2271_v38  ;;  %2002 = vmatmul.mubr.msk.f32.gmra.mxu1 %vm156_vm1, %v2271_v38 }
  0x67   :  { %670 = vmatprep.mubr.f32.mxu0 %v3209_v9  ;;  %831 = vmatprep.mubr.f32.mxu1 %v3209_v9 }
  0x6a   :  { %1985 = vmatmul.mubr.msk.f32.gmra.mxu0 %vm156_vm1, %v2288_v41  ;;  %2003 = vmatmul.mubr.msk.f32.gmra.mxu1 %vm156_vm1, %v2288_v41 }
  0x6b   :  { %676 = vmatprep.mubr.f32.mxu0 %v3209_v9  ;;  %837 = vmatprep.mubr.f32.mxu1 %v3209_v9 }
  0x6e   :  { %1986 = vmatmul.mubr.msk.f32.gmra.mxu0 %vm156_vm1, %v2305_v44  ;;  %2004 = vmatmul.mubr.msk.f32.gmra.mxu1 %vm156_vm1, %v2305_v44 }
  0x6f   :  { %682 = vmatprep.mubr.f32.mxu0 %v3209_v9  ;;  %843 = vmatprep.mubr.f32.mxu1 %v3209_v9 }
  0x72   :  { %1987 = vmatmul.mubr.msk.f32.gmra.mxu0 %vm156_vm1, %v2322_v47  ;;  %2005 = vmatmul.mubr.msk.f32.gmra.mxu1 %vm156_vm1, %v2322_v47 }
  0x73   :  { %688 = vmatprep.mubr.f32.mxu0 %v3209_v9  ;;  %849 = vmatprep.mubr.f32.mxu1 %v3209_v9 }
  0x76   :  { %1988 = vmatmul.mubr.msk.f32.gmra.mxu0 %vm156_vm1, %v2339_v50  ;;  %2006 = vmatmul.mubr.msk.f32.gmra.mxu1 %vm156_vm1, %v2339_v50 }
  0x77   :  { %694 = vmatprep.mubr.f32.mxu0 %v3209_v9  ;;  %855 = vmatprep.mubr.f32.mxu1 %v3209_v9 }
  0x7a   :  { %1989 = vmatmul.mubr.msk.f32.gmra.mxu0 %vm156_vm1, %v2356_v53  ;;  %2007 = vmatmul.mubr.msk.f32.gmra.mxu1 %vm156_vm1, %v2356_v53 }
  0x7b   :  { %700 = vmatprep.mubr.f32.mxu0 %v3209_v9  ;;  %861 = vmatprep.mubr.f32.mxu1 %v3209_v9 }
  0x7e   :  { %1990 = vmatmul.mubr.msk.f32.gmra.mxu0 %vm156_vm1, %v2373_v56  ;;  %2008 = vmatmul.mubr.msk.f32.gmra.mxu1 %vm156_vm1, %v2373_v56 }
  0x7f   :  { %706 = vmatprep.mubr.f32.mxu0 %v3209_v9  ;;  %867 = vmatprep.mubr.f32.mxu1 %v3209_v9 }
  0x82   :  { %1991 = vmatmul.mubr.msk.f32.gmra.mxu0 %vm156_vm1, %v2384_v57  ;;  %2009 = vmatmul.mubr.msk.f32.gmra.mxu1 %vm156_vm1, %v2384_v57 }
  0x83   :  { %1122 = vmatprep.mubr.f32.mxu0 %v3209_v9  ;;  %1235 = vmatprep.mubr.f32.mxu1 %v3209_v9 }
  0x8c   :  { %v2580_v41 = vpop.permute.xlu0 %153  ;;  %v2582_v44 = vpop.permute.xlu1 %143 }
  0x8d   :  { %3260 = vst [vmem:[#allocation25_spill] sm:$0xff] %v2580_v41 }
  0x90   :  { %v2584_v49 = vpop.permute.xlu0 %148  ;;  %v2586_v52 = vpop.permute.xlu1 %138 }
  0x91   :  { %3261 = vst [vmem:[#allocation26_spill] sm:$0xff] %v2584_v49 }
  0x94   :  { %v2588_v57 = vpop.permute.xlu0 %133 }
  0xc6   :  { %v2488_v58 = vpop.f32.mrf.mxu0  ;;  %v2490_v59 = vpop.f32.mrf.mxu1 }
  0xc7   :  { %3241 = vst [vmem:[#allocation6_spill] sm:$0xff] %v2488_v58  ;;  %3242 = vst [vmem:[#allocation7_spill] sm:$0xff] %v2490_v59  ;;  %v2590_v58 = vpop.permute.xlu1 %128 }
  0xc8   :  { %v2492_v60 = vpop.f32.mrf.mxu0  ;;  %v2494_v61 = vpop.f32.mrf.mxu1 }
  0xc9   :  { %3243 = vst [vmem:[#allocation8_spill] sm:$0xff] %v2492_v60  ;;  %3244 = vst [vmem:[#allocation9_spill] sm:$0xff] %v2494_v61 }
  0xca   :  { %v2496_v62 = vpop.f32.mrf.mxu0  ;;  %v2498_v63 = vpop.f32.mrf.mxu1 }
  0xcb   :  { %3245 = vst [vmem:[#allocation10_spill] sm:$0xff] %v2496_v62  ;;  %3246 = vst [vmem:[#allocation11_spill] sm:$0xff] %v2498_v63 }
  0xcc   :  { %v2500_v0 = vpop.f32.mrf.mxu0  ;;  %v2502_v1 = vpop.f32.mrf.mxu1 }
  0xcd   :  { %3247 = vst [vmem:[#allocation12_spill] sm:$0xff] %v2500_v0  ;;  %3248 = vst [vmem:[#allocation13_spill] sm:$0xff] %v2502_v1 }
  0xce   :  { %v2504_v2 = vpop.f32.mrf.mxu0  ;;  %v2506_v3 = vpop.f32.mrf.mxu1 }
  0xcf   :  { %3249 = vst [vmem:[#allocation14_spill] sm:$0xff] %v2504_v2  ;;  %3250 = vst [vmem:[#allocation15_spill] sm:$0xff] %v2506_v3  ;;  %v2594_v3 = vpop.permute.xlu0 %123 }
  0xd0   :  { %v2508_v4 = vpop.f32.mrf.mxu0  ;;  %v2510_v5 = vpop.f32.mrf.mxu1 }
  0xd1   :  { %3251 = vst [vmem:[#allocation16_spill] sm:$0xff] %v2508_v4  ;;  %3252 = vst [vmem:[#allocation17_spill] sm:$0xff] %v2510_v5 }
  0xd2   :  { %v2512_v6 = vpop.f32.mrf.mxu0  ;;  %v2514_v7 = vpop.f32.mrf.mxu1 }
  0xd3   :  { %3253 = vst [vmem:[#allocation18_spill] sm:$0xff] %v2512_v6  ;;  %3254 = vst [vmem:[#allocation19_spill] sm:$0xff] %v2514_v7 }
  0xd4   :  { %v2516_v8 = vpop.f32.mrf.mxu0  ;;  %v2518_v10 = vpop.f32.mrf.mxu1 }
  0xd5   :  { %3255 = vst [vmem:[#allocation20_spill] sm:$0xff] %v2516_v8  ;;  %3256 = vst [vmem:[#allocation21_spill] sm:$0xff] %v2518_v10 }
  0xd6   :  { %v2520_v11 = vpop.f32.mrf.mxu0  ;;  %v2522_v12 = vpop.f32.mrf.mxu1 }
  0xd7   :  { %3257 = vst [vmem:[#allocation22_spill] sm:$0xff] %v2520_v11  ;;  %3258 = vst [vmem:[#allocation23_spill] sm:$0xff] %v2522_v12 }
  0xd8   :  { %v2524_v13 = vpop.f32.mrf.mxu0  ;;  %v2526_v14 = vpop.f32.mrf.mxu1 }
  0xd9   :  { %3259 = vst [vmem:[#allocation24_spill] sm:$0xff] %v2526_v14 }
  0xda   :  { %v2528_v15 = vpop.f32.mrf.mxu0  ;;  %v2530_v16 = vpop.f32.mrf.mxu1 }
  0xdc   :  { %v2532_v17 = vpop.f32.mrf.mxu0  ;;  %v2534_v18 = vpop.f32.mrf.mxu1 }
  0xde   :  { %v2536_v19 = vpop.f32.mrf.mxu0  ;;  %v2538_v20 = vpop.f32.mrf.mxu1 }
  0xe0   :  { %v2540_v21 = vpop.f32.mrf.mxu0  ;;  %v2542_v22 = vpop.f32.mrf.mxu1 }
  0xe2   :  { %v2544_v23 = vpop.f32.mrf.mxu0  ;;  %v2546_v24 = vpop.f32.mrf.mxu1 }
  0xe4   :  { %v2548_v25 = vpop.f32.mrf.mxu0  ;;  %v2550_v26 = vpop.f32.mrf.mxu1 }
  0xe6   :  { %v2552_v27 = vpop.f32.mrf.mxu0  ;;  %v2554_v28 = vpop.f32.mrf.mxu1 }
  0xe8   :  { %v2556_v29 = vpop.f32.mrf.mxu0  ;;  %v2558_v30 = vpop.f32.mrf.mxu1 }
  0xea   :  { %v2560_v31 = vpop.f32.mrf.mxu0  ;;  %v2562_v32 = vpop.f32.mrf.mxu1 }
  0xec   :  { %v2564_v33 = vpop.f32.mrf.mxu0  ;;  %v2566_v34 = vpop.f32.mrf.mxu1 }
  0xee   :  { %v2568_v35 = vpop.f32.mrf.mxu0  ;;  %v2570_v36 = vpop.f32.mrf.mxu1 }
  0xf0   :  { %v2572_v37 = vpop.f32.mrf.mxu0  ;;  %v2574_v38 = vpop.f32.mrf.mxu1 }
  0xf2   :  { %v2576_v39 = vpop.f32.mrf.mxu0  ;;  %v2578_v40 = vpop.f32.mrf.mxu1 }
  0xf4   :  { %v364_v42 = vpop.f32.mrf.mxu0  ;;  %v525_v43 = vpop.f32.mrf.mxu1 }
  0xf6   :  { %v368_v45 = vpop.f32.mrf.mxu0  ;;  %v529_v46 = vpop.f32.mrf.mxu1 }
  0xf8   :  { %v370_v47 = vpop.f32.mrf.mxu0  ;;  %v531_v48 = vpop.f32.mrf.mxu1 }
  0xfa   :  { %v374_v50 = vpop.f32.mrf.mxu0  ;;  %v535_v51 = vpop.f32.mrf.mxu1 }
  0xfc   :  { %v376_v53 = vpop.f32.mrf.mxu0  ;;  %v537_v54 = vpop.f32.mrf.mxu1 }
  0xfd   :  { %v377_v12 = vadd.f32 %v376_v53, %v2582_v44 }
  0xfe   :  { %v380_v55 = vpop.f32.mrf.mxu0  ;;  %v541_v56 = vpop.f32.mrf.mxu1 }
  0xff   :  { %v381_v6 = vadd.f32 %v380_v55, %v2584_v49  ;;  %v542_v10 = vadd.f32 %v541_v56, %v2584_v49 }
 0x100   :  { %v382_v9 = vpop.f32.mrf.mxu0  ;;  %v543_v59 = vpop.f32.mrf.mxu1 }
 0x101   :  { %v383_v2 = vadd.f32 %v382_v9, %v2584_v49  ;;  %v544_v5 = vadd.f32 %v543_v59, %v2584_v49  ;;  %v538_v9 = vadd.f32 %v537_v54, %v2582_v44  ;;  %v2624_v54 = vpop.permute.xlu0 %113 }
 0x102   :  { %v386_v61 = vpop.f32.mrf.mxu0  ;;  %v547_v60 = vpop.f32.mrf.mxu1 }
 0x103   :  { %v387_v63 = vadd.f32 %v386_v61, %v2580_v41  ;;  %v548_v62 = vadd.f32 %v547_v60, %v2580_v41  ;;  %v2606_v60 = vpop.permute.xlu1 %118  ;;  %v987_v49 = vmax.f32 %v383_v2, 0.0  ;;  %v989_v53 = vmax.f32 %v544_v5, 0.0 }
 0x104   :  { %v388_v1 = vpop.f32.mrf.mxu0  ;;  %v549_v0 = vpop.f32.mrf.mxu1  ;;  %v526_v2 = vadd.f32 %v525_v43, %v2588_v57  ;;  %v979_v5 = vmax.f32 %v377_v12, 0.0  ;;  %v359_v12 = vadd.f32 %v2572_v37, %v2590_v58  ;;  %v520_v43 = vadd.f32 %v2574_v38, %v2590_v58 }
 0x105   :  { %v389_v4 = vadd.f32 %v388_v1, %v2580_v41  ;;  %v550_v7 = vadd.f32 %v549_v0, %v2580_v41  ;;  %v375_v1 = vadd.f32 %v374_v50, %v2582_v44  ;;  %v536_v0 = vadd.f32 %v535_v51, %v2582_v44 }
 0x106   :  { %v2602_v8 = vpop.f32.mrf.mxu0  ;;  %v2604_v61 = vpop.f32.mrf.mxu1  ;;  %v994_v41 = vmax.f32 %v387_v63, 0.0  ;;  %v996_v55 = vmax.f32 %v548_v62, 0.0  ;;  %v986_v50 = vmax.f32 %v381_v6, 0.0  ;;  %v988_v51 = vmax.f32 %v542_v10, 0.0 }
 0x107   :  { %3262 = vst [vmem:[#allocation27_spill] sm:$0xff] %v2602_v8  ;;  %3263 = vst [vmem:[#allocation28_spill] sm:$0xff] %v2604_v61  ;;  %v995_v11 = vmax.f32 %v389_v4, 0.0  ;;  %v997_v59 = vmax.f32 %v550_v7, 0.0  ;;  %v371_v61 = vadd.f32 %v370_v47, %v2586_v52  ;;  %v532_v8 = vadd.f32 %v531_v48, %v2586_v52 }
 0x108   :  { %v2612_v14 = vpop.f32.mrf.mxu0  ;;  %v2614_v56 = vpop.f32.mrf.mxu1  ;;  %v369_v4 = vadd.f32 %v368_v45, %v2586_v52  ;;  %v530_v7 = vadd.f32 %v529_v46, %v2586_v52  ;;  %v365_v47 = vadd.f32 %v364_v42, %v2588_v57  ;;  %v363_v6 = vadd.f32 %v2576_v39, %v2588_v57 }
 0x109   :  { %3264 = vst [vmem:[#allocation29_spill] sm:$0xff] %v2612_v14  ;;  %3265 = vst [vmem:[#allocation30_spill] sm:$0xff] %v2614_v56  ;;  %1058 = vmatprep.subr.mxu0 %v995_v11  ;;  %1171 = vmatprep.subr.mxu1 %v997_v59  ;;  %v981_v11 = vmax.f32 %v538_v9, 0.0  ;;  %v524_v10 = vadd.f32 %v2578_v40, %v2588_v57  ;;  %v978_v45 = vmax.f32 %v375_v1, 0.0  ;;  %v980_v46 = vmax.f32 %v536_v0, 0.0  ;;  %v2636_v42 = vpop.permute.xlu1 %108 }
 0x10a   :  { %v2620_v63 = vpop.f32.mrf.mxu0  ;;  %v2622_v62 = vpop.f32.mrf.mxu1  ;;  %1059 = vmatpush1.msra.mxu0 %v994_v41  ;;  %1172 = vmatpush1.msra.mxu1 %v996_v55  ;;  %v971_v39 = vmax.f32 %v371_v61, 0.0  ;;  %v357_v40 = vadd.f32 %v2568_v35, %v2590_v58  ;;  %v518_v9 = vadd.f32 %v2570_v36, %v2590_v58  ;;  %v970_v59 = vmax.f32 %v369_v4, 0.0 }
 0x10b   :  { %3266 = vst [vmem:[#allocation31_spill] sm:$0xff] %v2620_v63  ;;  %3267 = vst [vmem:[#allocation32_spill] sm:$0xff] %v2622_v62  ;;  %1060 = vmatprep.subr.mxu0 %v987_v49  ;;  %1173 = vmatprep.subr.mxu1 %v989_v53  ;;  %v973_v49 = vmax.f32 %v532_v8, 0.0  ;;  %v972_v1 = vmax.f32 %v530_v7, 0.0  ;;  %v353_v37 = vadd.f32 %v2564_v33, %v2594_v3  ;;  %v963_v38 = vmax.f32 %v365_v47, 0.0  ;;  %v2662_v33 = vpop.permute.xlu0 %103 }
 0x10c   :  { %v2632_v41 = vpop.f32.mrf.mxu0  ;;  %v2634_v48 = vpop.f32.mrf.mxu1  ;;  %1061 = vmatpush1.msra.mxu0 %v986_v50  ;;  %1174 = vmatpush1.msra.mxu1 %v988_v51  ;;  %v514_v8 = vadd.f32 %v2566_v34, %v2594_v3  ;;  %v965_v61 = vmax.f32 %v526_v2, 0.0  ;;  %v351_v35 = vadd.f32 %v2560_v31, %v2594_v3  ;;  %v512_v36 = vadd.f32 %v2562_v32, %v2594_v3 }
 0x10d   :  { %3268 = vst [vmem:[#allocation33_spill] sm:$0xff] %v2632_v41  ;;  %3269 = vst [vmem:[#allocation34_spill] sm:$0xff] %v2634_v48  ;;  %1062 = vmatprep.subr.mxu0 %v979_v5  ;;  %1175 = vmatprep.subr.mxu1 %v981_v11  ;;  %v962_v53 = vmax.f32 %v363_v6, 0.0  ;;  %v964_v4 = vmax.f32 %v524_v10, 0.0  ;;  %v347_v34 = vadd.f32 %v2556_v29, %v2606_v60  ;;  %v955_v31 = vmax.f32 %v359_v12, 0.0  ;;  %v2676_v29 = vpop.permute.xlu1 %98 }
 0x10e   :  { %v2646_v0 = vpop.f32.mrf.mxu0  ;;  %v2648_v55 = vpop.f32.mrf.mxu1  ;;  %1063 = vmatpush1.msra.mxu0 %v978_v45  ;;  %1176 = vmatpush1.msra.mxu1 %v980_v46  ;;  %v508_v51 = vadd.f32 %v2558_v30, %v2606_v60  ;;  %v957_v47 = vmax.f32 %v520_v43, 0.0  ;;  %v345_v32 = vadd.f32 %v2552_v27, %v2606_v60  ;;  %v506_v2 = vadd.f32 %v2554_v28, %v2606_v60 }
 0x10f   :  { %3270 = vst [vmem:[#allocation35_spill] sm:$0xff] %v2646_v0  ;;  %3271 = vst [vmem:[#allocation36_spill] sm:$0xff] %v2648_v55  ;;  %1064 = vmatprep.subr.mxu0 %v971_v39  ;;  %1177 = vmatprep.subr.mxu1 %v973_v49  ;;  %v954_v5 = vmax.f32 %v357_v40, 0.0  ;;  %v956_v11 = vmax.f32 %v518_v9, 0.0  ;;  %v341_v30 = vadd.f32 %v2548_v25, %v2624_v54  ;;  %v947_v27 = vmax.f32 %v353_v37, 0.0 }
 0x110   :  { %v2658_v7 = vpop.f32.mrf.mxu0  ;;  %v2660_v50 = vpop.f32.mrf.mxu1  ;;  %1065 = vmatpush1.msra.mxu0 %v970_v59  ;;  %1178 = vmatpush1.msra.mxu1 %v972_v1  ;;  %3276 = vst [vmem:[#allocation41_spill] sm:$0xff] %v2676_v29  ;;  %v502_v45 = vadd.f32 %v2550_v26, %v2624_v54  ;;  %v949_v46 = vmax.f32 %v514_v8, 0.0  ;;  %v339_v28 = vadd.f32 %v2544_v23, %v2624_v54  ;;  %v946_v43 = vmax.f32 %v351_v35, 0.0 }
 0x111   :  { %3272 = vst [vmem:[#allocation37_spill] sm:$0xff] %v2658_v7  ;;  %3273 = vst [vmem:[#allocation38_spill] sm:$0xff] %v2660_v50  ;;  %1066 = vmatprep.subr.mxu0 %v963_v38  ;;  %1179 = vmatprep.subr.mxu1 %v965_v61  ;;  %v500_v12 = vadd.f32 %v2546_v24, %v2624_v54  ;;  %v948_v39 = vmax.f32 %v512_v36, 0.0  ;;  %v335_v25 = vadd.f32 %v2540_v21, %v2636_v42  ;;  %v2702_v21 = vpop.permute.xlu0 %93 }
 0x112   :  { %v2672_v6 = vpop.f32.mrf.mxu0  ;;  %v2674_v10 = vpop.f32.mrf.mxu1  ;;  %1067 = vmatpush1.msra.mxu0 %v962_v53  ;;  %1180 = vmatpush1.msra.mxu1 %v964_v4  ;;  %v496_v26 = vadd.f32 %v2542_v22, %v2636_v42  ;;  %v939_v9 = vmax.f32 %v347_v34, 0.0  ;;  %v941_v59 = vmax.f32 %v508_v51, 0.0  ;;  %v333_v23 = vadd.f32 %v2536_v19, %v2636_v42  ;;  %3281 = vst [vmem:[#allocation46_spill] sm:$0xff] %v2702_v21 }
 0x113   :  { %3274 = vst [vmem:[#allocation39_spill] sm:$0xff] %v2672_v6  ;;  %3275 = vst [vmem:[#allocation40_spill] sm:$0xff] %v2674_v10  ;;  %1068 = vmatprep.subr.mxu0 %v955_v31  ;;  %1181 = vmatprep.subr.mxu1 %v957_v47  ;;  %v494_v24 = vadd.f32 %v2538_v20, %v2636_v42  ;;  %v938_v1 = vmax.f32 %v345_v32, 0.0  ;;  %v940_v37 = vmax.f32 %v506_v2, 0.0  ;;  %v931_v19 = vmax.f32 %v341_v30, 0.0  ;;  %v3285_v31 = vld [vmem:[#allocation24_spill] sm:$0xff] }
 0x114   :  { %v2686_v49 = vpop.f32.mrf.mxu0  ;;  %v2688_v40 = vpop.f32.mrf.mxu1  ;;  %1069 = vmatpush1.msra.mxu0 %v954_v5  ;;  %1182 = vmatpush1.msra.mxu1 %v956_v11  ;;  %v329_v22 = vadd.f32 %v2532_v17, %v2662_v33  ;;  %v490_v61 = vadd.f32 %v2534_v18, %v2662_v33  ;;  %v933_v35 = vmax.f32 %v502_v45, 0.0  ;;  %v327_v20 = vadd.f32 %v2528_v15, %v2662_v33  ;;  %v3287_v5 = vld [vmem:[#allocation23_spill] sm:$0xff]  ;;  %v3317_v10 = vld [vmem:[#allocation26_spill] sm:$0xff] }
 0x115   :  { %3277 = vst [vmem:[#allocation42_spill] sm:$0xff] %v2686_v49  ;;  %3278 = vst [vmem:[#allocation43_spill] sm:$0xff] %v2688_v40  ;;  %1070 = vmatprep.subr.mxu0 %v947_v27  ;;  %1183 = vmatprep.subr.mxu1 %v949_v46  ;;  %v488_v36 = vadd.f32 %v2530_v16, %v2662_v33  ;;  %v930_v53 = vmax.f32 %v339_v28, 0.0  ;;  %v932_v4 = vmax.f32 %v500_v12, 0.0  ;;  %v2716_v17 = vpop.permute.xlu1 %88  ;;  %v923_v15 = vmax.f32 %v335_v25, 0.0  ;;  %v3286_v16 = vld [vmem:[#allocation22_spill] sm:$0xff] }
 0x116   :  { %v2698_v8 = vpop.f32.mrf.mxu0  ;;  %v2700_v38 = vpop.f32.mrf.mxu1  ;;  %1071 = vmatpush1.msra.mxu0 %v946_v43  ;;  %1184 = vmatpush1.msra.mxu1 %v948_v39  ;;  %3284 = vst [vmem:[#allocation49_spill] sm:$0xff] %v2716_v17  ;;  %v323_v18 = vadd.f32 %v2524_v13, %v2676_v29  ;;  %v484_v47 = vadd.f32 %v3285_v31, %v2676_v29  ;;  %v925_v32 = vmax.f32 %v496_v26, 0.0  ;;  %v922_v30 = vmax.f32 %v333_v23, 0.0  ;;  %v3290_v13 = vld [vmem:[#allocation20_spill] sm:$0xff]  ;;  %v3291_v12 = vld [vmem:[#allocation21_spill] sm:$0xff]  ;;  %v3292_v26 = vld [vmem:[#allocation18_spill] sm:$0xff] }
 0x117   :  { %3279 = vst [vmem:[#allocation44_spill] sm:$0xff] %v2698_v8  ;;  %3280 = vst [vmem:[#allocation45_spill] sm:$0xff] %v2700_v38  ;;  %1072 = vmatprep.subr.mxu0 %v939_v9  ;;  %1185 = vmatprep.subr.mxu1 %v941_v59  ;;  %v321_v2 = vadd.f32 %v3286_v16, %v2676_v29  ;;  %v482_v11 = vadd.f32 %v3287_v5, %v2676_v29  ;;  %v924_v45 = vmax.f32 %v494_v24, 0.0  ;;  %v3293_v59 = vld [vmem:[#allocation19_spill] sm:$0xff]  ;;  %v3318_v40 = vld [vmem:[#allocation25_spill] sm:$0xff] }
 0x118   :  { %v2712_v34 = vpop.f32.mrf.mxu0  ;;  %v2714_v51 = vpop.f32.mrf.mxu1  ;;  %1073 = vmatpush1.msra.mxu0 %v938_v1  ;;  %1186 = vmatpush1.msra.mxu1 %v940_v37  ;;  %v317_v28 = vadd.f32 %v3290_v13, %v2702_v21  ;;  %v478_v43 = vadd.f32 %v3291_v12, %v2702_v21  ;;  %v915_v39 = vmax.f32 %v329_v22, 0.0  ;;  %v917_v25 = vmax.f32 %v490_v61, 0.0  ;;  %v3295_v22 = vld [vmem:[#allocation16_spill] sm:$0xff] }
 0x119   :  { %3282 = vst [vmem:[#allocation47_spill] sm:$0xff] %v2712_v34  ;;  %3283 = vst [vmem:[#allocation48_spill] sm:$0xff] %v2714_v51  ;;  %1074 = vmatprep.subr.mxu0 %v931_v19  ;;  %1187 = vmatprep.subr.mxu1 %v933_v35  ;;  %v315_v9 = vadd.f32 %v3292_v26, %v2702_v21  ;;  %v476_v23 = vadd.f32 %v3293_v59, %v2702_v21  ;;  %v914_v24 = vmax.f32 %v327_v20, 0.0  ;;  %v2742_v35 = vpop.permute.xlu0 %83  ;;  %v3297_v20 = vld [vmem:[#allocation14_spill] sm:$0xff]  ;;  %v2756_v12 = vpop.permute.xlu1 %78 }
 0x11a   :  { %v2726_v27 = vpop.f32.mrf.mxu0  ;;  %v2728_v46 = vpop.f32.mrf.mxu1  ;;  %1075 = vmatpush1.msra.mxu0 %v930_v53  ;;  %1188 = vmatpush1.msra.mxu1 %v932_v4  ;;  %v916_v1 = vmax.f32 %v488_v36, 0.0  ;;  %3294 = vst [vmem:[#allocation23_spill] sm:$0xff] %v2742_v35  ;;  %v311_v61 = vadd.f32 %v3295_v22, %v2716_v17  ;;  %v3296_v53 = vld [vmem:[#allocation17_spill] sm:$0xff]  ;;  %v907_v31 = vmax.f32 %v323_v18, 0.0  ;;  %v309_v36 = vadd.f32 %v3297_v20, %v2716_v17  ;;  %v3300_v18 = vld [vmem:[#allocation12_spill] sm:$0xff]  ;;  %v3303_v22 = vld [vmem:[#allocation11_spill] sm:$0xff] }
 0x11b   :  { %3288 = vst [vmem:[#allocation24_spill] sm:$0xff] %v2726_v27  ;;  %3289 = vst [vmem:[#allocation22_spill] sm:$0xff] %v2728_v46  ;;  %1076 = vmatprep.subr.mxu0 %v923_v15  ;;  %1189 = vmatprep.subr.mxu1 %v925_v32  ;;  %v472_v4 = vadd.f32 %v3296_v53, %v2716_v17  ;;  %v909_v15 = vmax.f32 %v484_v47, 0.0  ;;  %v3298_v32 = vld [vmem:[#allocation15_spill] sm:$0xff]  ;;  %v906_v5 = vmax.f32 %v321_v2, 0.0  ;;  %v899_v26 = vmax.f32 %v317_v28, 0.0 }
 0x11c   :  { %v2738_v37 = vpop.f32.mrf.mxu0  ;;  %v2740_v19 = vpop.f32.mrf.mxu1  ;;  %1077 = vmatpush1.msra.mxu0 %v922_v30  ;;  %1190 = vmatpush1.msra.mxu1 %v924_v45  ;;  %v470_v16 = vadd.f32 %v3298_v32, %v2716_v17  ;;  %v908_v30 = vmax.f32 %v482_v11, 0.0  ;;  %3299 = vst [vmem:[#allocation20_spill] sm:$0xff] %v2756_v12  ;;  %v305_v47 = vadd.f32 %v3300_v18, %v2742_v35  ;;  %v901_v59 = vmax.f32 %v478_v43, 0.0  ;;  %v3302_v2 = vld [vmem:[#allocation10_spill] sm:$0xff]  ;;  %v3304_v18 = vld [vmem:[#allocation8_spill] sm:$0xff]  ;;  %v3305_v43 = vld [vmem:[#allocation9_spill] sm:$0xff] }
 0x11d   :  { %1078 = vmatprep.subr.mxu0 %v915_v39  ;;  %1191 = vmatprep.subr.mxu1 %v917_v25  ;;  %v3301_v39 = vld [vmem:[#allocation13_spill] sm:$0xff]  ;;  %v303_v11 = vadd.f32 %v3302_v2, %v2742_v35  ;;  %v464_v53 = vadd.f32 %v3303_v22, %v2742_v35  ;;  %v299_v28 = vadd.f32 %v3304_v18, %v2756_v12  ;;  %v3306_v2 = vld [vmem:[#allocation6_spill] sm:$0xff]  ;;  %v890_v56 = vmax.f32 %v309_v36, 0.0 }
 0x11e   :  { %v2752_v45 = vpop.f32.mrf.mxu0  ;;  %v2754_v13 = vpop.f32.mrf.mxu1  ;;  %1079 = vmatpush1.msra.mxu0 %v914_v24  ;;  %1192 = vmatpush1.msra.mxu1 %v916_v1  ;;  %v466_v25 = vadd.f32 %v3301_v39, %v2742_v35  ;;  %v898_v24 = vmax.f32 %v315_v9, 0.0  ;;  %v900_v1 = vmax.f32 %v476_v23, 0.0  ;;  %v893_v39 = vmax.f32 %v472_v4, 0.0  ;;  %v3307_v23 = vld [vmem:[#allocation7_spill] sm:$0xff] }
 0x11f   :  { %1080 = vmatprep.subr.mxu0 %v907_v31  ;;  %1193 = vmatprep.subr.mxu1 %v909_v15  ;;  %v460_v31 = vadd.f32 %v3305_v43, %v2756_v12  ;;  %v891_v15 = vmax.f32 %v311_v61, 0.0  ;;  %v297_v9 = vadd.f32 %v3306_v2, %v2756_v12  ;;  %v458_v22 = vadd.f32 %v3307_v23, %v2756_v12 }
 0x120   :  { %v2766_v20 = vpop.f32.mrf.mxu0  ;;  %v2768_v32 = vpop.f32.mrf.mxu1  ;;  %1081 = vmatpush1.msra.mxu0 %v906_v5  ;;  %1194 = vmatpush1.msra.mxu1 %v908_v30  ;;  %v892_v14 = vmax.f32 %v470_v16, 0.0  ;;  %v883_v18 = vmax.f32 %v305_v47, 0.0  ;;  %v885_v43 = vmax.f32 %v466_v25, 0.0  ;;  %v882_v61 = vmax.f32 %v303_v11, 0.0  ;;  %v2793_v25 = vld [vmem:[%s3204_s3] sm:$0xff] }
 0x121   :  { %1082 = vmatprep.subr.mxu0 %v899_v26  ;;  %1195 = vmatprep.subr.mxu1 %v901_v59  ;;  %v884_v4 = vmax.f32 %v464_v53, 0.0  ;;  %v875_v36 = vmax.f32 %v299_v28, 0.0  ;;  %v877_v16 = vmax.f32 %v460_v31, 0.0  ;;  %v874_v2 = vmax.f32 %v297_v9, 0.0  ;;  %3308 = vst [vmem:[#allocation21_spill] sm:$0xff] %v2793_v25  ;;  %v2810_v28 = vld [vmem:[%s3204_s3 + $0x8] sm:$0xff] }
 0x122   :  { %v2778_v5 = vpop.f32.mrf.mxu0  ;;  %v2780_v30 = vpop.f32.mrf.mxu1  ;;  %1083 = vmatpush1.msra.mxu0 %v898_v24  ;;  %1196 = vmatpush1.msra.mxu1 %v900_v1  ;;  %v876_v23 = vmax.f32 %v458_v22, 0.0  ;;  %v3309_v1 = vmov 0.0   ;;  %3310 = vst [vmem:[#allocation18_spill] sm:$0xff] %v2810_v28  ;;  %v2827_v22 = vld [vmem:[%s3204_s3 + $0x10] sm:$0xff] }
 0x123   :  { %1084 = vmatprep.subr.mxu0 %v891_v15  ;;  %1197 = vmatprep.subr.mxu1 %v893_v39  ;;  %3311 = vst [vmem:[#allocation19_spill] sm:$0xff] %v2827_v22 }
 0x124   :  { %v2782_v26 = vpop.f32.mrf.mxu0  ;;  %v2784_v59 = vpop.f32.mrf.mxu1  ;;  %1085 = vmatpush1.msra.mxu0 %v890_v56  ;;  %1198 = vmatpush1.msra.mxu1 %v892_v14 }
 0x125   :  { %1086 = vmatprep.subr.mxu0 %v883_v18  ;;  %1199 = vmatprep.subr.mxu1 %v885_v43 }
 0x126   :  { %v2786_v24 = vpop.f32.mrf.mxu0  ;;  %v2788_v47 = vpop.f32.mrf.mxu1  ;;  %1087 = vmatpush1.msra.mxu0 %v882_v61  ;;  %1200 = vmatpush1.msra.mxu1 %v884_v4 }
 0x127   :  { %1088 = vmatprep.subr.mxu0 %v875_v36  ;;  %1201 = vmatprep.subr.mxu1 %v877_v16  ;;  %v2844_v36 = vld [vmem:[%s3204_s3 + $0x18] sm:$0xff] }
 0x128   :  { %v2795_v14 = vpop.f32.mrf.mxu0  ;;  %v2797_v56 = vpop.f32.mrf.mxu1  ;;  %1089 = vmatpush1.msra.mxu0 %v874_v2  ;;  %1202 = vmatpush1.msra.mxu1 %v876_v23  ;;  %3312 = vst [vmem:[#allocation16_spill] sm:$0xff] %v2844_v36 }
 0x129   :  { %1123 = vmatmul.mubr.f32.vlgmr.msra.gmra.mxu0 %v2793_v25  ;;  %1236 = vmatmul.mubr.f32.vlgmr.msra.gmra.mxu1 %v2793_v25 }
 0x12a   :  { %v2801_v11 = vpop.f32.mrf.mxu0  ;;  %v2803_v53 = vpop.f32.mrf.mxu1  ;;  %1128 = vmatprep.mubr.f32.mxu0 %v3309_v1  ;;  %1241 = vmatprep.mubr.f32.mxu1 %v3309_v1 }
 0x12c   :  { %v2812_v31 = vpop.f32.mrf.mxu0  ;;  %v2814_v15 = vpop.f32.mrf.mxu1 }
 0x12d   :  { %1129 = vmatmul.mubr.f32.gmra.mxu0 %v2810_v28  ;;  %1242 = vmatmul.mubr.f32.gmra.mxu1 %v2810_v28  ;;  %v2857_v28 = vld [vmem:[%s3204_s3 + $0x20] sm:$0xff] }
 0x12e   :  { %v2818_v39 = vpop.f32.mrf.mxu0  ;;  %v2820_v9 = vpop.f32.mrf.mxu1  ;;  %1134 = vmatprep.mubr.f32.mxu0 %v3309_v1  ;;  %1247 = vmatprep.mubr.f32.mxu1 %v3309_v1  ;;  %3313 = vst [vmem:[#allocation17_spill] sm:$0xff] %v2857_v28 }
 0x130   :  { %v2829_v18 = vpop.f32.mrf.mxu0  ;;  %v2831_v43 = vpop.f32.mrf.mxu1 }
 0x131   :  { %1135 = vmatmul.mubr.f32.gmra.mxu0 %v2827_v22  ;;  %1248 = vmatmul.mubr.f32.gmra.mxu1 %v2827_v22 }
 0x132   :  { %v2835_v61 = vpop.f32.mrf.mxu0  ;;  %v2837_v4 = vpop.f32.mrf.mxu1  ;;  %1140 = vmatprep.mubr.f32.mxu0 %v3309_v1  ;;  %1253 = vmatprep.mubr.f32.mxu1 %v3309_v1 }
 0x134   :  { %v2846_v16 = vpop.f32.mrf.mxu0  ;;  %v2848_v2 = vpop.f32.mrf.mxu1 }
 0x135   :  { %1141 = vmatmul.mubr.f32.gmra.mxu0 %v2844_v36  ;;  %1254 = vmatmul.mubr.f32.gmra.mxu1 %v2844_v36  ;;  %v2866_v36 = vld [vmem:[%s3204_s3 + $0x28] sm:$0xff] }
 0x136   :  { %v690_v23 = vpop.f32.mrf.mxu0  ;;  %v851_v22 = vpop.f32.mrf.mxu1  ;;  %1146 = vmatprep.mubr.f32.mxu0 %v3309_v1  ;;  %1259 = vmatprep.mubr.f32.mxu1 %v3309_v1  ;;  %3314 = vst [vmem:[#allocation14_spill] sm:$0xff] %v2866_v36 }
 0x138   :  { %v692_v25 = vpop.f32.mrf.mxu0  ;;  %v853_v12 = vpop.f32.mrf.mxu1 }
 0x139   :  { %1147 = vmatmul.mubr.f32.gmra.mxu0 %v2857_v28  ;;  %1260 = vmatmul.mubr.f32.gmra.mxu1 %v2857_v28  ;;  %v2875_v28 = vld [vmem:[%s3204_s3 + $0x30] sm:$0xff] }
 0x13a   :  { %v696_v62 = vpop.f32.mrf.mxu0  ;;  %v857_v63 = vpop.f32.mrf.mxu1  ;;  %1152 = vmatprep.mubr.f32.mxu0 %v3309_v1  ;;  %1265 = vmatprep.mubr.f32.mxu1 %v3309_v1  ;;  %3315 = vst [vmem:[#allocation15_spill] sm:$0xff] %v2875_v28 }
 0x13c   :  { %v698_v48 = vpop.f32.mrf.mxu0  ;;  %v859_v41 = vpop.f32.mrf.mxu1 }
 0x13d   :  { %1153 = vmatmul.mubr.f32.gmra.mxu0 %v2866_v36  ;;  %1266 = vmatmul.mubr.f32.gmra.mxu1 %v2866_v36  ;;  %v2884_v36 = vld [vmem:[%s3204_s3 + $0x38] sm:$0xff] }
 0x13e   :  { %v702_v35 = vpop.f32.mrf.mxu0  ;;  %v863_v55 = vpop.f32.mrf.mxu1  ;;  %1158 = vmatprep.mubr.f32.mxu0 %v3309_v1  ;;  %1271 = vmatprep.mubr.f32.mxu1 %v3309_v1  ;;  %3316 = vst [vmem:[#allocation12_spill] sm:$0xff] %v2884_v36 }
 0x13f   :  { %v703_v29 = vadd.f32 %v702_v35, %v3317_v10  ;;  %v693_v35 = vadd.f32 %v692_v25, %v2586_v52 }
 0x140   :  { %v704_v0 = vpop.f32.mrf.mxu0  ;;  %v865_v50 = vpop.f32.mrf.mxu1 }
 0x141   :  { %1159 = vmatmul.mubr.f32.gmra.mxu0 %v2875_v28  ;;  %1272 = vmatmul.mubr.f32.gmra.mxu1 %v2875_v28  ;;  %v705_v6 = vadd.f32 %v704_v0, %v3317_v10  ;;  %v866_v28 = vadd.f32 %v865_v50, %v3317_v10  ;;  %v864_v0 = vadd.f32 %v863_v55, %v3317_v10  ;;  %v975_v25 = vmax.f32 %v693_v35, 0.0 }
 0x142   :  { %v708_v7 = vpop.f32.mrf.mxu0  ;;  %v869_v17 = vpop.f32.mrf.mxu1  ;;  %1164 = vmatprep.mubr.f32.mxu0 %v3309_v1  ;;  %1277 = vmatprep.mubr.f32.mxu1 %v3309_v1  ;;  %v860_v50 = vadd.f32 %v859_v41, %v2582_v44  ;;  %v854_v55 = vadd.f32 %v853_v12, %v2586_v52  ;;  %v852_v41 = vadd.f32 %v851_v22, %v2586_v52 }
 0x143   :  { %v709_v49 = vadd.f32 %v708_v7, %v3318_v40  ;;  %v870_v21 = vadd.f32 %v869_v17, %v3318_v40  ;;  %v699_v7 = vadd.f32 %v698_v48, %v2582_v44  ;;  %v991_v10 = vmax.f32 %v705_v6, 0.0 }
 0x144   :  { %v710_v38 = vpop.f32.mrf.mxu0  ;;  %v871_v8 = vpop.f32.mrf.mxu1  ;;  %v993_v27 = vmax.f32 %v866_v28, 0.0  ;;  %v691_v48 = vadd.f32 %v690_v23, %v2586_v52  ;;  %v685_v6 = vadd.f32 %v2835_v61, %v2588_v57  ;;  %v846_v52 = vadd.f32 %v2837_v4, %v2588_v57 }
 0x145   :  { %v711_v51 = vadd.f32 %v710_v38, %v3318_v40  ;;  %v872_v34 = vadd.f32 %v871_v8, %v3318_v40  ;;  %1165 = vmatmul.mubr.f32.gmra.mxu0 %v2884_v36  ;;  %1278 = vmatmul.mubr.f32.gmra.mxu1 %v2884_v36  ;;  %v697_v40 = vadd.f32 %v696_v62, %v2582_v44  ;;  %v998_v46 = vmax.f32 %v709_v49, 0.0 }
 0x146   :  { %1348 = vmatprep.mubr.f32.mxu0 %v3309_v1  ;;  %1461 = vmatprep.mubr.f32.mxu1 %v3309_v1  ;;  %v858_v8 = vadd.f32 %v857_v63, %v2582_v44  ;;  %v1000_v36 = vmax.f32 %v870_v21, 0.0  ;;  %v687_v44 = vadd.f32 %v2846_v16, %v2588_v57  ;;  %v848_v63 = vadd.f32 %v2848_v2, %v2588_v57 }
 0x147   :  { %v999_v17 = vmax.f32 %v711_v51, 0.0  ;;  %v1001_v38 = vmax.f32 %v872_v34, 0.0  ;;  %v990_v51 = vmax.f32 %v703_v29, 0.0  ;;  %v992_v34 = vmax.f32 %v864_v0, 0.0 }
 0x148   :  { %v983_v62 = vmax.f32 %v699_v7, 0.0  ;;  %v985_v49 = vmax.f32 %v860_v50, 0.0  ;;  %v982_v29 = vmax.f32 %v697_v40, 0.0  ;;  %v984_v21 = vmax.f32 %v858_v8, 0.0 }
 0x149   :  { %1284 = vmatprep.subr.mxu0 %v999_v17  ;;  %1397 = vmatprep.subr.mxu1 %v1001_v38  ;;  %v842_v12 = vadd.f32 %v2831_v43, %v2590_v58  ;;  %v977_v28 = vmax.f32 %v854_v55, 0.0  ;;  %v840_v57 = vadd.f32 %v2820_v9, %v2590_v58  ;;  %v974_v22 = vmax.f32 %v691_v48, 0.0  ;;  %v3320_v48 = vld [vmem:[#allocation22_spill] sm:$0xff] }
 0x14a   :  { %1285 = vmatpush1.msra.mxu0 %v998_v46  ;;  %1398 = vmatpush1.msra.mxu1 %v1000_v36  ;;  %v681_v46 = vadd.f32 %v2829_v18, %v2590_v58  ;;  %v976_v61 = vmax.f32 %v852_v41, 0.0  ;;  %v675_v18 = vadd.f32 %v2812_v31, %v2594_v3  ;;  %v836_v43 = vadd.f32 %v2814_v15, %v2594_v3 }
 0x14b   :  { %1286 = vmatprep.subr.mxu0 %v991_v10  ;;  %1399 = vmatprep.subr.mxu1 %v993_v27  ;;  %v679_v27 = vadd.f32 %v2818_v39, %v2590_v58  ;;  %v967_v4 = vmax.f32 %v687_v44, 0.0  ;;  %v969_v36 = vmax.f32 %v848_v63, 0.0  ;;  %v673_v39 = vadd.f32 %v2801_v11, %v2594_v3  ;;  %v3319_v10 = vld [vmem:[#allocation24_spill] sm:$0xff] }
 0x14c   :  { %1287 = vmatpush1.msra.mxu0 %v990_v51  ;;  %1400 = vmatpush1.msra.mxu1 %v992_v34  ;;  %v834_v58 = vadd.f32 %v2803_v53, %v2594_v3  ;;  %v966_v9 = vmax.f32 %v685_v6, 0.0  ;;  %v968_v16 = vmax.f32 %v846_v52, 0.0  ;;  %v669_v31 = vadd.f32 %v2795_v14, %v2606_v60  ;;  %v3321_v51 = vld [vmem:[#allocation41_spill] sm:$0xff]  ;;  %v3322_v34 = vld [vmem:[#allocation47_spill] sm:$0xff]  ;;  %v3323_v44 = vld [vmem:[#allocation48_spill] sm:$0xff] }
 0x14d   :  { %1288 = vmatprep.subr.mxu0 %v983_v62  ;;  %1401 = vmatprep.subr.mxu1 %v985_v49  ;;  %v830_v15 = vadd.f32 %v2797_v56, %v2606_v60  ;;  %v959_v2 = vmax.f32 %v681_v46, 0.0  ;;  %v961_v23 = vmax.f32 %v842_v12, 0.0  ;;  %v667_v11 = vadd.f32 %v2786_v24, %v2606_v60  ;;  %v3324_v49 = vld [vmem:[#allocation44_spill] sm:$0xff]  ;;  %v3325_v52 = vld [vmem:[#allocation45_spill] sm:$0xff]  ;;  %v3326_v46 = vld [vmem:[#allocation46_spill] sm:$0xff] }
 0x14e   :  { %1289 = vmatpush1.msra.mxu0 %v982_v29  ;;  %1402 = vmatpush1.msra.mxu1 %v984_v21  ;;  %v828_v3 = vadd.f32 %v2788_v47, %v2606_v60  ;;  %v958_v53 = vmax.f32 %v679_v27, 0.0  ;;  %v960_v0 = vmax.f32 %v840_v57, 0.0  ;;  %v663_v14 = vadd.f32 %v2782_v26, %v2624_v54  ;;  %v3327_v12 = vld [vmem:[#allocation42_spill] sm:$0xff] }
 0x14f   :  { %1290 = vmatprep.subr.mxu0 %v975_v25  ;;  %1403 = vmatprep.subr.mxu1 %v977_v28  ;;  %v824_v56 = vadd.f32 %v2784_v59, %v2624_v54  ;;  %v951_v7 = vmax.f32 %v675_v18, 0.0  ;;  %v953_v50 = vmax.f32 %v836_v43, 0.0  ;;  %v661_v24 = vadd.f32 %v2778_v5, %v2624_v54  ;;  %v3328_v28 = vld [vmem:[#allocation43_spill] sm:$0xff]  ;;  %v3330_v43 = vld [vmem:[#allocation40_spill] sm:$0xff] }
 0x150   :  { %1291 = vmatpush1.msra.mxu0 %v974_v22  ;;  %1404 = vmatpush1.msra.mxu1 %v976_v61  ;;  %v822_v60 = vadd.f32 %v2780_v30, %v2624_v54  ;;  %v950_v47 = vmax.f32 %v673_v39, 0.0  ;;  %v952_v17 = vmax.f32 %v834_v58, 0.0  ;;  %v657_v26 = vadd.f32 %v2766_v20, %v2636_v42  ;;  %v3329_v61 = vld [vmem:[#allocation39_spill] sm:$0xff]  ;;  %v3331_v58 = vld [vmem:[#allocation49_spill] sm:$0xff] }
 0x151   :  { %1292 = vmatprep.subr.mxu0 %v967_v4  ;;  %1405 = vmatprep.subr.mxu1 %v969_v36  ;;  %v818_v59 = vadd.f32 %v2768_v32, %v2636_v42  ;;  %v943_v38 = vmax.f32 %v669_v31, 0.0  ;;  %v945_v40 = vmax.f32 %v830_v15, 0.0  ;;  %v655_v5 = vadd.f32 %v2752_v45, %v2636_v42  ;;  %v3333_v31 = vld [vmem:[#allocation38_spill] sm:$0xff] }
 0x152   :  { %1293 = vmatpush1.msra.mxu0 %v966_v9  ;;  %1406 = vmatpush1.msra.mxu1 %v968_v16  ;;  %v816_v54 = vadd.f32 %v2754_v13, %v2636_v42  ;;  %v942_v30 = vmax.f32 %v667_v11, 0.0  ;;  %v944_v8 = vmax.f32 %v828_v3, 0.0  ;;  %v651_v20 = vadd.f32 %v2738_v37, %v2662_v33  ;;  %v3332_v9 = vld [vmem:[#allocation37_spill] sm:$0xff]  ;;  %v3334_v11 = vld [vmem:[#allocation35_spill] sm:$0xff] }
 0x153   :  { %1294 = vmatprep.subr.mxu0 %v959_v2  ;;  %1407 = vmatprep.subr.mxu1 %v961_v23  ;;  %v812_v32 = vadd.f32 %v2740_v19, %v2662_v33  ;;  %v935_v35 = vmax.f32 %v663_v14, 0.0  ;;  %v937_v55 = vmax.f32 %v824_v56, 0.0  ;;  %v649_v45 = vadd.f32 %v3319_v10, %v2662_v33 }
 0x154   :  { %1295 = vmatpush1.msra.mxu0 %v958_v53  ;;  %1408 = vmatpush1.msra.mxu1 %v960_v0  ;;  %v810_v42 = vadd.f32 %v3320_v48, %v2662_v33  ;;  %v934_v13 = vmax.f32 %v661_v24, 0.0  ;;  %v936_v41 = vmax.f32 %v822_v60, 0.0  ;;  %v645_v37 = vadd.f32 %v3322_v34, %v3321_v51  ;;  %v3335_v53 = vld [vmem:[#allocation36_spill] sm:$0xff]  ;;  %v3338_v60 = vld [vmem:[#allocation34_spill] sm:$0xff]  ;;  %v3344_v48 = vld [vmem:[#allocation27_spill] sm:$0xff] }
 0x155   :  { %1296 = vmatprep.subr.mxu0 %v951_v7  ;;  %1409 = vmatprep.subr.mxu1 %v953_v50  ;;  %v806_v19 = vadd.f32 %v3323_v44, %v3321_v51  ;;  %v927_v63 = vmax.f32 %v657_v26, 0.0  ;;  %v929_v62 = vmax.f32 %v818_v59, 0.0  ;;  %v643_v6 = vadd.f32 %v3324_v49, %v3321_v51  ;;  %v3336_v7 = vld [vmem:[#allocation23_spill] sm:$0xff]  ;;  %v3337_v50 = vld [vmem:[#allocation33_spill] sm:$0xff] }
 0x156   :  { %1297 = vmatpush1.msra.mxu0 %v950_v47  ;;  %1410 = vmatpush1.msra.mxu1 %v952_v17  ;;  %v804_v33 = vadd.f32 %v3325_v52, %v3321_v51  ;;  %v926_v29 = vmax.f32 %v655_v5, 0.0  ;;  %v928_v21 = vmax.f32 %v816_v54, 0.0  ;;  %v639_v25 = vadd.f32 %v3327_v12, %v3326_v46  ;;  %v3339_v59 = vld [vmem:[#allocation31_spill] sm:$0xff]  ;;  %v3350_v12 = vld [vmem:[#allocation17_spill] sm:$0xff] }
 0x157   :  { %1298 = vmatprep.subr.mxu0 %v943_v38  ;;  %1411 = vmatprep.subr.mxu1 %v945_v40  ;;  %v800_v27 = vadd.f32 %v3328_v28, %v3326_v46  ;;  %v919_v57 = vmax.f32 %v651_v20, 0.0  ;;  %v921_v22 = vmax.f32 %v812_v32, 0.0  ;;  %v637_v18 = vadd.f32 %v3329_v61, %v3326_v46  ;;  %v3340_v40 = vld [vmem:[#allocation32_spill] sm:$0xff]  ;;  %v3342_v20 = vld [vmem:[#allocation29_spill] sm:$0xff]  ;;  %v3352_v28 = vld [vmem:[#allocation15_spill] sm:$0xff] }
 0x158   :  { %1299 = vmatpush1.msra.mxu0 %v942_v30  ;;  %1412 = vmatpush1.msra.mxu1 %v944_v8  ;;  %v798_v4 = vadd.f32 %v3330_v43, %v3326_v46  ;;  %v918_v36 = vmax.f32 %v649_v45, 0.0  ;;  %v920_v39 = vmax.f32 %v810_v42, 0.0  ;;  %v633_v16 = vadd.f32 %v3332_v9, %v3331_v58  ;;  %v3341_v8 = vld [vmem:[#allocation20_spill] sm:$0xff] }
 0x159   :  { %1300 = vmatprep.subr.mxu0 %v935_v35  ;;  %1413 = vmatprep.subr.mxu1 %v937_v55  ;;  %v794_v15 = vadd.f32 %v3333_v31, %v3331_v58  ;;  %v911_v2 = vmax.f32 %v645_v37, 0.0  ;;  %v913_v23 = vmax.f32 %v806_v19, 0.0  ;;  %v631_v3 = vadd.f32 %v3334_v11, %v3331_v58  ;;  %v3343_v35 = vld [vmem:[#allocation30_spill] sm:$0xff]  ;;  %v3349_v46 = vld [vmem:[#allocation16_spill] sm:$0xff] }
 0x15a   :  { %1301 = vmatpush1.msra.mxu0 %v934_v13  ;;  %1414 = vmatpush1.msra.mxu1 %v936_v41  ;;  %v792_v0 = vadd.f32 %v3335_v53, %v3331_v58  ;;  %v910_v14 = vmax.f32 %v643_v6, 0.0  ;;  %v912_v56 = vmax.f32 %v804_v33, 0.0  ;;  %v627_v24 = vadd.f32 %v3337_v50, %v3336_v7  ;;  %v3345_v13 = vld [vmem:[#allocation28_spill] sm:$0xff]  ;;  %v3346_v33 = vld [vmem:[#allocation21_spill] sm:$0xff]  ;;  %v3058_v50 = vpop.permute.xlu0 %1055 }
 0x15b   :  { %1302 = vmatprep.subr.mxu0 %v927_v63  ;;  %1415 = vmatprep.subr.mxu1 %v929_v62  ;;  %v788_v47 = vadd.f32 %v3338_v60, %v3336_v7  ;;  %v903_v17 = vmax.f32 %v639_v25, 0.0  ;;  %v905_v26 = vmax.f32 %v800_v27, 0.0  ;;  %v625_v38 = vadd.f32 %v3339_v59, %v3336_v7  ;;  %v3351_v25 = vld [vmem:[#allocation14_spill] sm:$0xff]  ;;  %v3353_v27 = vld [vmem:[#allocation12_spill] sm:$0xff] }
 0x15c   :  { %1303 = vmatpush1.msra.mxu0 %v926_v29  ;;  %1416 = vmatpush1.msra.mxu1 %v928_v21  ;;  %v786_v5 = vadd.f32 %v3340_v40, %v3336_v7  ;;  %v902_v54 = vmax.f32 %v637_v18, 0.0  ;;  %v904_v30 = vmax.f32 %v798_v4, 0.0  ;;  %v621_v32 = vadd.f32 %v3342_v20, %v3341_v8  ;;  %v3347_v29 = vld [vmem:[#allocation18_spill] sm:$0xff]  ;;  %v3348_v21 = vld [vmem:[#allocation19_spill] sm:$0xff] }
 0x15d   :  { %1304 = vmatprep.subr.mxu0 %v919_v57  ;;  %1417 = vmatprep.subr.mxu1 %v921_v22  ;;  %v782_v55 = vadd.f32 %v3343_v35, %v3341_v8  ;;  %v895_v10 = vmax.f32 %v633_v16, 0.0  ;;  %v897_v45 = vmax.f32 %v794_v15, 0.0  ;;  %v619_v42 = vadd.f32 %v3344_v48, %v3341_v8 }
 0x15e   :  { %1305 = vmatpush1.msra.mxu0 %v918_v36  ;;  %1418 = vmatpush1.msra.mxu1 %v920_v39  ;;  %v780_v41 = vadd.f32 %v3345_v13, %v3341_v8  ;;  %v894_v51 = vmax.f32 %v631_v3, 0.0  ;;  %v896_v34 = vmax.f32 %v792_v0, 0.0  ;;  %v887_v37 = vmax.f32 %v627_v24, 0.0  ;;  %v3062_v40 = vpop.permute.xlu0 %1045 }
 0x15f   :  { %1306 = vmatprep.subr.mxu0 %v911_v2  ;;  %1419 = vmatprep.subr.mxu1 %v913_v23  ;;  %v889_v44 = vmax.f32 %v788_v47, 0.0  ;;  %v886_v19 = vmax.f32 %v625_v38, 0.0  ;;  %v888_v63 = vmax.f32 %v786_v5, 0.0  ;;  %v879_v62 = vmax.f32 %v621_v32, 0.0  ;;  %v3060_v47 = vpop.permute.xlu1 %1050 }
 0x160   :  { %1307 = vmatpush1.msra.mxu0 %v910_v14  ;;  %1420 = vmatpush1.msra.mxu1 %v912_v56  ;;  %v881_v49 = vmax.f32 %v782_v55, 0.0  ;;  %v878_v6 = vmax.f32 %v619_v42, 0.0  ;;  %v880_v52 = vmax.f32 %v780_v41, 0.0 }
 0x161   :  { %1308 = vmatprep.subr.mxu0 %v903_v17  ;;  %1421 = vmatprep.subr.mxu1 %v905_v26 }
 0x162   :  { %1309 = vmatpush1.msra.mxu0 %v902_v54  ;;  %1422 = vmatpush1.msra.mxu1 %v904_v30 }
 0x163   :  { %1310 = vmatprep.subr.mxu0 %v895_v10  ;;  %1423 = vmatprep.subr.mxu1 %v897_v45  ;;  %v3064_v30 = vpop.permute.xlu1 %1040 }
 0x164   :  { %1311 = vmatpush1.msra.mxu0 %v894_v51  ;;  %1424 = vmatpush1.msra.mxu1 %v896_v34 }
 0x165   :  { %1312 = vmatprep.subr.mxu0 %v887_v37  ;;  %1425 = vmatprep.subr.mxu1 %v889_v44  ;;  %v3076_v44 = vpop.permute.xlu0 %1035 }
 0x166   :  { %1313 = vmatpush1.msra.mxu0 %v886_v19  ;;  %1426 = vmatpush1.msra.mxu1 %v888_v63 }
 0x167   :  { %1314 = vmatprep.subr.mxu0 %v879_v62  ;;  %1427 = vmatprep.subr.mxu1 %v881_v49 }
 0x168   :  { %1315 = vmatpush1.msra.mxu0 %v878_v6  ;;  %1428 = vmatpush1.msra.mxu1 %v880_v52 }
 0x169   :  { %1349 = vmatmul.mubr.f32.vlgmr.msra.gmra.mxu0 %v3346_v33  ;;  %1462 = vmatmul.mubr.f32.vlgmr.msra.gmra.mxu1 %v3346_v33 }
 0x16a   :  { %1354 = vmatprep.mubr.f32.mxu0 %v3309_v1  ;;  %1467 = vmatprep.mubr.f32.mxu1 %v3309_v1 }
 0x16d   :  { %1355 = vmatmul.mubr.f32.gmra.mxu0 %v3347_v29  ;;  %1468 = vmatmul.mubr.f32.gmra.mxu1 %v3347_v29 }
 0x16e   :  { %1360 = vmatprep.mubr.f32.mxu0 %v3309_v1  ;;  %1473 = vmatprep.mubr.f32.mxu1 %v3309_v1 }
 0x171   :  { %1361 = vmatmul.mubr.f32.gmra.mxu0 %v3348_v21  ;;  %1474 = vmatmul.mubr.f32.gmra.mxu1 %v3348_v21  ;;  %v3082_v21 = vpop.permute.xlu1 %1030 }
 0x172   :  { %1366 = vmatprep.mubr.f32.mxu0 %v3309_v1  ;;  %1479 = vmatprep.mubr.f32.mxu1 %v3309_v1 }
 0x175   :  { %1367 = vmatmul.mubr.f32.gmra.mxu0 %v3349_v46  ;;  %1480 = vmatmul.mubr.f32.gmra.mxu1 %v3349_v46 }
 0x176   :  { %1372 = vmatprep.mubr.f32.mxu0 %v3309_v1  ;;  %1485 = vmatprep.mubr.f32.mxu1 %v3309_v1 }
 0x179   :  { %1373 = vmatmul.mubr.f32.gmra.mxu0 %v3350_v12  ;;  %1486 = vmatmul.mubr.f32.gmra.mxu1 %v3350_v12 }
 0x17a   :  { %1378 = vmatprep.mubr.f32.mxu0 %v3309_v1  ;;  %1491 = vmatprep.mubr.f32.mxu1 %v3309_v1 }
 0x17d   :  { %1379 = vmatmul.mubr.f32.gmra.mxu0 %v3351_v25  ;;  %1492 = vmatmul.mubr.f32.gmra.mxu1 %v3351_v25 }
 0x17e   :  { %1384 = vmatprep.mubr.f32.mxu0 %v3309_v1  ;;  %1497 = vmatprep.mubr.f32.mxu1 %v3309_v1 }
 0x181   :  { %1385 = vmatmul.mubr.f32.gmra.mxu0 %v3352_v28  ;;  %1498 = vmatmul.mubr.f32.gmra.mxu1 %v3352_v28 }
 0x182   :  { %1390 = vmatprep.mubr.f32.mxu0 %v3309_v1  ;;  %1503 = vmatprep.mubr.f32.mxu1 %v3309_v1 }
 0x185   :  { %1391 = vmatmul.mubr.f32.gmra.mxu0 %v3353_v27  ;;  %1504 = vmatmul.mubr.f32.gmra.mxu1 %v3353_v27 }
 0x186   :  { %1645 = vmatprep.mubr.f32.mxu0 %v3309_v1  ;;  %1716 = vmatprep.mubr.f32.mxu1 %v3309_v1 }
 0x1e9   :  { %v3034_v57 = vpop.f32.mrf.mxu0  ;;  %v3036_v22 = vpop.f32.mrf.mxu1 }
 0x1eb   :  { %v3038_v61 = vpop.f32.mrf.mxu0  ;;  %v3040_v18 = vpop.f32.mrf.mxu1 }
 0x1ed   :  { %v3042_v43 = vpop.f32.mrf.mxu0  ;;  %v3044_v4 = vpop.f32.mrf.mxu1 }
 0x1ef   :  { %v3046_v36 = vpop.f32.mrf.mxu0  ;;  %v3048_v39 = vpop.f32.mrf.mxu1 }
 0x1f1   :  { %v3050_v58 = vpop.f32.mrf.mxu0  ;;  %v3052_v9 = vpop.f32.mrf.mxu1 }
 0x1f3   :  { %v3054_v16 = vpop.f32.mrf.mxu0  ;;  %v3056_v31 = vpop.f32.mrf.mxu1 }
 0x1f5   :  { %v1142_v15 = vpop.f32.mrf.mxu0  ;;  %v1255_v2 = vpop.f32.mrf.mxu1 }
 0x1f7   :  { %v1144_v23 = vpop.f32.mrf.mxu0  ;;  %v1257_v11 = vpop.f32.mrf.mxu1 }
 0x1f8   :  { %v1145_v27 = vadd.f32 %v1144_v23, %v3076_v44  ;;  %v1252_v23 = vadd.f32 %v3056_v31, %v3082_v21 }
 0x1f9   :  { %v1148_v3 = vpop.f32.mrf.mxu0  ;;  %v1261_v53 = vpop.f32.mrf.mxu1 }
 0x1fa   :  { %v1149_v46 = vadd.f32 %v1148_v3, %v3064_v30  ;;  %v1262_v12 = vadd.f32 %v1261_v53, %v3064_v30  ;;  %v1139_v53 = vadd.f32 %v3054_v16, %v3082_v21 }
 0x1fb   :  { %v1150_v0 = vpop.f32.mrf.mxu0  ;;  %v1263_v14 = vpop.f32.mrf.mxu1 }
 0x1fc   :  { %v1151_v6 = vadd.f32 %v1150_v0, %v3064_v30  ;;  %v1264_v52 = vadd.f32 %v1263_v14, %v3064_v30  ;;  %v1258_v0 = vadd.f32 %v1257_v11, %v3076_v44 }
 0x1fd   :  { %v1154_v56 = vpop.f32.mrf.mxu0  ;;  %v1267_v7 = vpop.f32.mrf.mxu1 }
 0x1fe   :  { %v1155_v19 = vadd.f32 %v1154_v56, %v3062_v40  ;;  %v1268_v63 = vadd.f32 %v1267_v7, %v3062_v40  ;;  %v1143_v7 = vadd.f32 %v1142_v15, %v3076_v44  ;;  %v1545_v11 = vmax.f32 %v1264_v52, 0.0 }
 0x1ff   :  { %v1156_v24 = vpop.f32.mrf.mxu0  ;;  %v1269_v60 = vpop.f32.mrf.mxu1  ;;  %v1137_v15 = vadd.f32 %v3050_v58, %v3082_v21 }
 0x200   :  { %v1157_v41 = vadd.f32 %v1156_v24, %v3062_v40  ;;  %v1270_v51 = vadd.f32 %v1269_v60, %v3062_v40  ;;  %v1256_v24 = vadd.f32 %v1255_v2, %v3076_v44  ;;  %v1550_v60 = vmax.f32 %v1155_v19, 0.0 }
 0x201   :  { %v1160_v17 = vpop.f32.mrf.mxu0  ;;  %v1273_v26 = vpop.f32.mrf.mxu1  ;;  %v1552_v3 = vmax.f32 %v1268_v63, 0.0  ;;  %v1250_v2 = vadd.f32 %v3052_v9, %v3082_v21 }
 0x202   :  { %v1161_v42 = vadd.f32 %v1160_v17, %v3060_v47  ;;  %v1274_v13 = vadd.f32 %v1273_v26, %v3060_v47  ;;  %v1551_v56 = vmax.f32 %v1157_v41, 0.0  ;;  %v1553_v14 = vmax.f32 %v1270_v51, 0.0  ;;  %v3094_v26 = vpop.permute.xlu0 %1025 }
 0x203   :  { %v1162_v59 = vpop.f32.mrf.mxu0  ;;  %v1275_v38 = vpop.f32.mrf.mxu1  ;;  %v1543_v17 = vmax.f32 %v1151_v6, 0.0  ;;  %v1133_v16 = vadd.f32 %v3046_v36, %v3094_v26  ;;  %v1246_v31 = vadd.f32 %v3048_v39, %v3094_v26  ;;  %v1131_v58 = vadd.f32 %v3042_v43, %v3094_v26 }
 0x204   :  { %v1163_v55 = vadd.f32 %v1162_v59, %v3060_v47  ;;  %v1276_v10 = vadd.f32 %v1275_v38, %v3060_v47  ;;  %v1558_v25 = vmax.f32 %v1161_v42, 0.0  ;;  %v1560_v28 = vmax.f32 %v1274_v13, 0.0 }
 0x205   :  { %v1166_v5 = vpop.f32.mrf.mxu0  ;;  %v1279_v54 = vpop.f32.mrf.mxu1  ;;  %v1542_v59 = vmax.f32 %v1149_v46, 0.0  ;;  %v1544_v38 = vmax.f32 %v1262_v12, 0.0  ;;  %v1244_v9 = vadd.f32 %v3044_v4, %v3094_v26  ;;  %v1521_v42 = vmax.f32 %v1246_v31, 0.0 }
 0x206   :  { %v1167_v8 = vadd.f32 %v1166_v5, %v3058_v50  ;;  %v1280_v20 = vadd.f32 %v1279_v54, %v3058_v50  ;;  %v1559_v33 = vmax.f32 %v1163_v55, 0.0  ;;  %v1561_v29 = vmax.f32 %v1276_v10, 0.0 }
 0x207   :  { %v1168_v32 = vpop.f32.mrf.mxu0  ;;  %v1281_v35 = vpop.f32.mrf.mxu1  ;;  %v1535_v5 = vmax.f32 %v1145_v27, 0.0  ;;  %v1537_v54 = vmax.f32 %v1258_v0, 0.0  ;;  %v1529_v55 = vmax.f32 %v1252_v23, 0.0  ;;  %v1526_v10 = vmax.f32 %v1137_v15, 0.0 }
 0x208   :  { %v1169_v45 = vadd.f32 %v1168_v32, %v3058_v50  ;;  %v1282_v48 = vadd.f32 %v1281_v35, %v3058_v50  ;;  %v1566_v62 = vmax.f32 %v1167_v8, 0.0  ;;  %v1568_v49 = vmax.f32 %v1280_v20, 0.0  ;;  %v3104_v8 = vpop.permute.xlu1 %1020 }
 0x209   :  { %v1534_v20 = vmax.f32 %v1143_v7, 0.0  ;;  %v1536_v32 = vmax.f32 %v1256_v24, 0.0  ;;  %v1127_v36 = vadd.f32 %v3038_v61, %v3104_v8  ;;  %v1240_v39 = vadd.f32 %v3040_v18, %v3104_v8 }
 0x20a   :  { %v1567_v34 = vmax.f32 %v1169_v45, 0.0  ;;  %v1569_v37 = vmax.f32 %v1282_v48, 0.0  ;;  %v1527_v35 = vmax.f32 %v1139_v53, 0.0  ;;  %v1125_v43 = vadd.f32 %v3034_v57, %v3104_v8 }
 0x20b   :  { %v1238_v4 = vadd.f32 %v3036_v22, %v3104_v8  ;;  %v1528_v45 = vmax.f32 %v1250_v2, 0.0  ;;  %v1519_v48 = vmax.f32 %v1133_v16, 0.0  ;;  %v1518_v61 = vmax.f32 %v1131_v58, 0.0  ;;  %v3121_v22 = vld [vmem:[%s3206_s5] sm:$0x1] }
 0x20c   :  { %1597 = vmatprep.subr.mxu0 %v1567_v34  ;;  %1668 = vmatprep.subr.mxu1 %v1569_v37  ;;  %v1520_v18 = vmax.f32 %v1244_v9, 0.0  ;;  %v1511_v13 = vmax.f32 %v1127_v36, 0.0  ;;  %v1513_v41 = vmax.f32 %v1240_v39, 0.0  ;;  %v1510_v57 = vmax.f32 %v1125_v43, 0.0 }
 0x20d   :  { %1598 = vmatpush1.msra.mxu0 %v1566_v62  ;;  %1669 = vmatpush1.msra.mxu1 %v1568_v49  ;;  %v1512_v51 = vmax.f32 %v1238_v4, 0.0 }
 0x20e   :  { %1599 = vmatprep.subr.mxu0 %v1559_v33  ;;  %1670 = vmatprep.subr.mxu1 %v1561_v29 }
 0x20f   :  { %1600 = vmatpush1.msra.mxu0 %v1558_v25  ;;  %1671 = vmatpush1.msra.mxu1 %v1560_v28 }
 0x210   :  { %1601 = vmatprep.subr.mxu0 %v1551_v56  ;;  %1672 = vmatprep.subr.mxu1 %v1553_v14 }
 0x211   :  { %1602 = vmatpush1.msra.mxu0 %v1550_v60  ;;  %1673 = vmatpush1.msra.mxu1 %v1552_v3 }
 0x212   :  { %1603 = vmatprep.subr.mxu0 %v1543_v17  ;;  %1674 = vmatprep.subr.mxu1 %v1545_v11 }
 0x213   :  { %1604 = vmatpush1.msra.mxu0 %v1542_v59  ;;  %1675 = vmatpush1.msra.mxu1 %v1544_v38 }
 0x214   :  { %1605 = vmatprep.subr.mxu0 %v1535_v5  ;;  %1676 = vmatprep.subr.mxu1 %v1537_v54 }
 0x215   :  { %1606 = vmatpush1.msra.mxu0 %v1534_v20  ;;  %1677 = vmatpush1.msra.mxu1 %v1536_v32 }
 0x216   :  { %1607 = vmatprep.subr.mxu0 %v1527_v35  ;;  %1678 = vmatprep.subr.mxu1 %v1529_v55 }
 0x217   :  { %1608 = vmatpush1.msra.mxu0 %v1526_v10  ;;  %1679 = vmatpush1.msra.mxu1 %v1528_v45 }
 0x218   :  { %1609 = vmatprep.subr.mxu0 %v1519_v48  ;;  %1680 = vmatprep.subr.mxu1 %v1521_v42 }
 0x219   :  { %1610 = vmatpush1.msra.mxu0 %v1518_v61  ;;  %1681 = vmatpush1.msra.mxu1 %v1520_v18 }
 0x21a   :  { %1611 = vmatprep.subr.mxu0 %v1511_v13  ;;  %1682 = vmatprep.subr.mxu1 %v1513_v41 }
 0x21b   :  { %1612 = vmatpush1.msra.mxu0 %v1510_v57  ;;  %1683 = vmatpush1.msra.mxu1 %v1512_v51 }
 0x21c   :  { %2010 = vmatmul.mubr.msk.f32.vlgmr.msra.gmra.mxu0 %vm1577_vm2, %v3121_v22  ;;  %2011 = vmatmul.mubr.msk.f32.vlgmr.msra.gmra.mxu1 %vm1577_vm2, %v3121_v22 }
 0x21d   :  { %1787 = vmatprep.mubr.f32.mxu0 %v3309_v1  ;;  %1858 = vmatprep.mubr.f32.mxu1 %v3309_v1 }
 0x229   :  { %v3129_v34 = vpop.f32.mrf.mxu0  ;;  %v3131_v37 = vpop.f32.mrf.mxu1 }
 0x22b   :  { %v3133_v19 = vpop.f32.mrf.mxu0  ;;  %v3135_v63 = vpop.f32.mrf.mxu1 }
 0x22d   :  { %v3137_v62 = vpop.f32.mrf.mxu0  ;;  %v3139_v49 = vpop.f32.mrf.mxu1 }
 0x22f   :  { %v3141_v6 = vpop.f32.mrf.mxu0  ;;  %v3143_v52 = vpop.f32.mrf.mxu1 }
 0x231   :  { %v3145_v33 = vpop.f32.mrf.mxu0  ;;  %v3147_v29 = vpop.f32.mrf.mxu1 }
 0x233   :  { %v1364_v1 = vpop.f32.mrf.mxu0  ;;  %v1477_v46 = vpop.f32.mrf.mxu1 }
 0x235   :  { %v1368_v12 = vpop.f32.mrf.mxu0  ;;  %v1481_v25 = vpop.f32.mrf.mxu1 }
 0x237   :  { %v1370_v28 = vpop.f32.mrf.mxu0  ;;  %v1483_v27 = vpop.f32.mrf.mxu1 }
 0x238   :  { %v1484_v51 = vadd.f32 %v1483_v27, %v3076_v44  ;;  %v1363_v27 = vadd.f32 %v3145_v33, %v3082_v21  ;;  %v1357_v33 = vadd.f32 %v3137_v62, %v3094_v26  ;;  %v1351_v62 = vadd.f32 %v3129_v34, %v3104_v8 }
 0x239   :  { %v1374_v0 = vpop.f32.mrf.mxu0  ;;  %v1487_v56 = vpop.f32.mrf.mxu1 }
 0x23a   :  { %v1488_v13 = vadd.f32 %v1487_v56, %v3064_v30  ;;  %v1478_v56 = vadd.f32 %v1477_v46, %v3082_v21  ;;  %v1514_v34 = vmax.f32 %v1351_v62, 0.0 }
 0x23b   :  { %v1376_v14 = vpop.f32.mrf.mxu0  ;;  %v1489_v7 = vpop.f32.mrf.mxu1 }
 0x23c   :  { %v1377_v42 = vadd.f32 %v1376_v14, %v3064_v30 }
 0x23d   :  { %v1380_v24 = vpop.f32.mrf.mxu0  ;;  %v1493_v60 = vpop.f32.mrf.mxu1 }
 0x23e   :  { %v1381_v4 = vadd.f32 %v1380_v24, %v3062_v40  ;;  %v1494_v10 = vadd.f32 %v1493_v60, %v3062_v40  ;;  %v1482_v60 = vadd.f32 %v1481_v25, %v3076_v44  ;;  %v1359_v25 = vadd.f32 %v3141_v6, %v3094_v26 }
 0x23f   :  { %v1382_v3 = vpop.f32.mrf.mxu0  ;;  %v1495_v53 = vpop.f32.mrf.mxu1  ;;  %v1353_v6 = vadd.f32 %v3133_v19, %v3104_v8  ;;  %v1522_v19 = vmax.f32 %v1357_v33, 0.0 }
 0x240   :  { %v1383_v39 = vadd.f32 %v1382_v3, %v3062_v40  ;;  %v1496_v35 = vadd.f32 %v1495_v53, %v3062_v40  ;;  %v1371_v40 = vadd.f32 %v1370_v28, %v3076_v44  ;;  %v1554_v3 = vmax.f32 %v1381_v4, 0.0 }
 0x241   :  { %v1386_v23 = vpop.f32.mrf.mxu0  ;;  %v1499_v17 = vpop.f32.mrf.mxu1  ;;  %v1547_v53 = vmax.f32 %v1377_v42, 0.0 }
 0x242   :  { %v1387_v32 = vadd.f32 %v1386_v23, %v3060_v47  ;;  %v1500_v36 = vadd.f32 %v1499_v17, %v3060_v47  ;;  %v1555_v24 = vmax.f32 %v1383_v39, 0.0  ;;  %v1557_v14 = vmax.f32 %v1496_v35, 0.0 }
 0x243   :  { %v1388_v11 = vpop.f32.mrf.mxu0  ;;  %v1501_v15 = vpop.f32.mrf.mxu1  ;;  %v1539_v46 = vmax.f32 %v1371_v40, 0.0  ;;  %v1541_v17 = vmax.f32 %v1484_v51, 0.0 }
 0x244   :  { %v1389_v54 = vadd.f32 %v1388_v11, %v3060_v47  ;;  %v1502_v58 = vadd.f32 %v1501_v15, %v3060_v47  ;;  %v1375_v47 = vadd.f32 %v1374_v0, %v3064_v30  ;;  %v1562_v41 = vmax.f32 %v1387_v32, 0.0 }
 0x245   :  { %v1392_v2 = vpop.f32.mrf.mxu0  ;;  %v1505_v59 = vpop.f32.mrf.mxu1  ;;  %v1564_v57 = vmax.f32 %v1500_v36, 0.0  ;;  %v1556_v0 = vmax.f32 %v1494_v10, 0.0  ;;  %v1540_v11 = vmax.f32 %v1482_v60, 0.0  ;;  %v1576_v32 = vstv %s3207_s6  ;;  %s2045_s6 = smov [#allocation3]  }
 0x246   :  { %v1393_v38 = vadd.f32 %v1392_v2, %v3058_v50  ;;  %v1506_v16 = vadd.f32 %v1505_v59, %v3058_v50  ;;  %v1563_v61 = vmax.f32 %v1389_v54, 0.0  ;;  %v1565_v18 = vmax.f32 %v1502_v58, 0.0  ;;  %s1930_s8 = sshll.u32 %s2045_s6, 4  ;;  %s1931_s8 = int_to_ptr.vmem [resolvable:$true] %s1930_s8 }
 0x247   :  { %v1394_v31 = vpop.f32.mrf.mxu0  ;;  %v1507_v5 = vpop.f32.mrf.mxu1  ;;  %v1546_v23 = vmax.f32 %v1375_v47, 0.0  ;;  %v1533_v2 = vmax.f32 %v1478_v56, 0.0  ;;  %v2044_v58 = vmov 1966171168   ;;  %s2020_s9 = scalar_lea.vmem %s1931_s8, 128  ;;  %p2025_p1 = scmp.lt.s32.totalorder %s1931_s8, %s1931_s8 }
 0x248   :  { %v1395_v9 = vadd.f32 %v1394_v31, %v3058_v50  ;;  %v1508_v20 = vadd.f32 %v1507_v5, %v3058_v50  ;;  %v1570_v45 = vmax.f32 %v1393_v38, 0.0  ;;  %v1572_v48 = vmax.f32 %v1506_v16, 0.0  ;;  %p2021_p0 = scmp.ne.s32.totalorder %s1931_s8, %s2020_s9  ;;  %p2026_p2 = scmp.lt.s32.totalorder %s2020_s9, %s2020_s9 }
 0x249   :  { %v1490_v50 = vadd.f32 %v1489_v7, %v3064_v30  ;;  %v1369_v7 = vadd.f32 %v1368_v12, %v3076_v44  ;;  %v1365_v30 = vadd.f32 %v1364_v1, %v3082_v21  ;;  %v1476_v12 = vadd.f32 %v3147_v29, %v3082_v21 }
 0x24a   :  { %v1571_v55 = vmax.f32 %v1395_v9, 0.0  ;;  %v1573_v43 = vmax.f32 %v1508_v20, 0.0  ;;  %v1548_v44 = vmax.f32 %v1488_v13, 0.0  ;;  %v1472_v1 = vadd.f32 %v3143_v52, %v3094_v26  ;;  %p2027_p3 = por %p2026_p2, %p2025_p1 }
 0x24b   :  { %v1549_v28 = vmax.f32 %v1490_v50, 0.0  ;;  %v1470_v21 = vadd.f32 %v3139_v49, %v3094_v26  ;;  %v1538_v29 = vmax.f32 %v1369_v7, 0.0  ;;  %v1466_v52 = vadd.f32 %v3135_v63, %v3104_v8 }
 0x24c   :  { %1739 = vmatprep.subr.mxu0 %v1571_v55  ;;  %1810 = vmatprep.subr.mxu1 %v1573_v43  ;;  %v1531_v15 = vmax.f32 %v1365_v30, 0.0  ;;  %v1464_v26 = vadd.f32 %v3131_v37, %v3104_v8  ;;  %v1530_v49 = vmax.f32 %v1363_v27, 0.0  ;;  %v1532_v59 = vmax.f32 %v1476_v12, 0.0  ;;  %p2028_p4 = pnand %p2027_p3, %p2021_p0 }
 0x24d   :  { %1740 = vmatpush1.msra.mxu0 %v1570_v45  ;;  %1811 = vmatpush1.msra.mxu1 %v1572_v48  ;;  %v1523_v38 = vmax.f32 %v1359_v25, 0.0  ;;  %v1525_v16 = vmax.f32 %v1472_v1, 0.0  ;;  %v1524_v63 = vmax.f32 %v1470_v21, 0.0  ;;  %v1515_v31 = vmax.f32 %v1353_v6, 0.0 }
 0x24e   :  { %1741 = vmatprep.subr.mxu0 %v1563_v61  ;;  %1812 = vmatprep.subr.mxu1 %v1565_v18  ;;  %v1517_v5 = vmax.f32 %v1466_v52, 0.0  ;;  %v1516_v54 = vmax.f32 %v1464_v26, 0.0  ;;  %v1878_v9 = vunpack.c.l.s4 %v2044_v58  ;;  %v1880_v20 = vlaneseq }
 0x24f   :  { %1742 = vmatpush1.msra.mxu0 %v1562_v41  ;;  %1813 = vmatpush1.msra.mxu1 %v1564_v57 }
 0x250   :  { %1743 = vmatprep.subr.mxu0 %v1555_v24  ;;  %1814 = vmatprep.subr.mxu1 %v1557_v14  ;;  %v1879_v35 = vunpack.c.0.s8 %v1878_v9  ;;  %v1881_v55 = vshrl.u32 %v1880_v20, 7 }
 0x251   :  { %1744 = vmatpush1.msra.mxu0 %v1554_v3  ;;  %1815 = vmatpush1.msra.mxu1 %v1556_v0 }
 0x252   :  { %1745 = vmatprep.subr.mxu0 %v1547_v53  ;;  %1816 = vmatprep.subr.mxu1 %v1549_v28  ;;  %v1882_v42 = vsub.s32 %v1879_v35, %v1881_v55 }
 0x253   :  { %1746 = vmatpush1.msra.mxu0 %v1546_v23  ;;  %1817 = vmatpush1.msra.mxu1 %v1548_v44 }
 0x254   :  { %1747 = vmatprep.subr.mxu0 %v1539_v46  ;;  %1818 = vmatprep.subr.mxu1 %v1541_v17 }
 0x255   :  { %1748 = vmatpush1.msra.mxu0 %v1538_v29  ;;  %1819 = vmatpush1.msra.mxu1 %v1540_v11 }
 0x256   :  { %1749 = vmatprep.subr.mxu0 %v1531_v15  ;;  %1820 = vmatprep.subr.mxu1 %v1533_v2 }
 0x257   :  { %1750 = vmatpush1.msra.mxu0 %v1530_v49  ;;  %1821 = vmatpush1.msra.mxu1 %v1532_v59 }
 0x258   :  { %1751 = vmatprep.subr.mxu0 %v1523_v38  ;;  %1822 = vmatprep.subr.mxu1 %v1525_v16 }
 0x259   :  { %1752 = vmatpush1.msra.mxu0 %v1522_v19  ;;  %1823 = vmatpush1.msra.mxu1 %v1524_v63 }
 0x25a   :  { %1753 = vmatprep.subr.mxu0 %v1515_v31  ;;  %1824 = vmatprep.subr.mxu1 %v1517_v5 }
 0x25b   :  { %1754 = vmatpush1.msra.mxu0 %v1514_v34  ;;  %1825 = vmatpush1.msra.mxu1 %v1516_v54 }
 0x25c   :  { %2012 = vmatmul.mubr.msk.f32.vlgmr.msra.gmra.mxu0 %vm1577_vm2, %v3121_v22  ;;  %2013 = vmatmul.mubr.msk.f32.vlgmr.msra.gmra.mxu1 %vm1577_vm2, %v3121_v22 }
 0x2dc   :  { %v1647_v8 = vpop.f32.mrf.mxu0  ;;  %v1718_v37 = vpop.f32.mrf.mxu1 }
 0x2dd   :  { %v1648_v43 = vadd.f32 %v1647_v8, %v1576_v32  ;;  %v1719_v4 = vadd.f32 %v1718_v37, %v1576_v32 }
 0x2de   :  { %v1649_v36 = vpop.f32.mrf.mxu0  ;;  %v1720_v39 = vpop.f32.mrf.mxu1 }
 0x2df   :  { %v1650_v10 = vadd.f32 %v1649_v36, %v1576_v32  ;;  %v1721_v45 = vadd.f32 %v1720_v39, %v1576_v32 }
 0x2e1   :  { %v1873_v48 = vcombine.low %v1648_v43, %v1650_v10  ;;  %v1874_v22 = vcombine.low %v1719_v4, %v1721_v45 }
 0x2e3   :  { %v1883_v18 = vrot.slane %v1873_v48, %v1882_v42  ;;  %v1890_v47 = vrot.slane %v1874_v22, %v1882_v42 }
 0x2e5   :  { %v1905_v0 = vcombine.low %v1883_v18, %v1890_v47 }
 0x2e7   :  { %v1913_v56 = vrot.slane %v1905_v0, %v1882_v42 }
 0x31c   :  { %v1789_v50 = vpop.f32.mrf.mxu0  ;;  %v1860_v61 = vpop.f32.mrf.mxu1 }
 0x31d   :  { %v1790_v57 = vadd.f32 %v1789_v50, %v1576_v32  ;;  %v1861_v40 = vadd.f32 %v1860_v61, %v1576_v32 }
 0x31e   :  { %v1791_v13 = vpop.f32.mrf.mxu0  ;;  %v1862_v41 = vpop.f32.mrf.mxu1 }
 0x31f   :  { %v1792_v51 = vadd.f32 %v1791_v13, %v1576_v32  ;;  %v1863_v24 = vadd.f32 %v1862_v41, %v1576_v32 }
 0x321   :  { %v1875_v14 = vcombine.low %v1790_v57, %v1792_v51  ;;  %v1876_v7 = vcombine.low %v1861_v40, %v1863_v24 }
 0x323   :  { %v1897_v60 = vrot.slane %v1875_v14, %v1882_v42  ;;  %v1904_v3 = vrot.slane %v1876_v7, %v1882_v42 }
 0x325   :  { %v1906_v30 = vcombine.low %v1897_v60, %v1904_v3 }
 0x327   :  { %v1920_v53 = vrot.slane %v1906_v30, %v1882_v42 }
 0x329   :  { %v1921_v28 = vcombine.low %v1913_v56, %v1920_v53 }
 0x32b   :  { %1923 = vst [vmem:[#allocation3] sm:$0xff] %v1921_v28 }
 0x32c   :  { %2031 = shalt.err (!%p2028_p4)
}
 0x32d   :  { %1933 = dma.vmem_to_hbm [thread:$0]  %s1931_s8, 128, %s3208_s7, [#allocation4]  }
 0x32e   :  { %2040 = dma.done.wait [#allocation4], 128  }
 0x32f   :  { %2041 = vsyncadd [#allocation4], 4294967168 }
 0x330   :  { %1937 = vsyncpa [#allocation4], 1 }

</bundles_post_ra>
